<compile_context>
chip_gen: v6e
topology: v6e:2x2x1
jax: 0.10.0
libtpu: 0.0.40
codegen_flags: <defaults>
</compile_context>

<pallas_src>
import functools
import math

import jax
import jax.numpy as jnp
from jax.experimental import pallas as pl
from jax.experimental.pallas import tpu as pltpu

LN_EPS = 1e-5  # nn.LayerNorm default eps


def _layernorm_fast(x, g, b):
    # E[x^2] - mu^2 form: the two cross-lane reductions are independent and overlap in the XLU.
    mu = jnp.mean(x, axis=-1, keepdims=True)
    ms = jnp.mean(x * x, axis=-1, keepdims=True)
    var = jnp.maximum(ms - mu * mu, 0.0)
    return (x - mu) * jax.lax.rsqrt(var + LN_EPS) * g + b


# ------------------------------ Pallas kernel --------------------------------

def regression_head_kernel(top_k,
                           scale_ref, q_ref, r_ref, vals_ref, w_ref,
                           q_ln0_g, q_ln0_b, q_b, q_ln1_g, q_ln1_b,
                           r_ln0_g, r_ln0_b, r_b, r_ln1_g, r_ln1_b,
                           out_ref):
    bt, N = vals_ref.shape          # batches in this tile, refs per batch
    H = q_b.shape[1]

    inv_scale = scale_ref[0, 0]     # 1 / (tau * sqrt(H)), runtime SMEM scalar

    # --- LN0 in f32 on bf16-stored activations
    q = _layernorm_fast(q_ref[...].astype(jnp.float32), q_ln0_g[...], q_ln0_b[...])   # (bt, D)
    r = _layernorm_fast(r_ref[...].astype(jnp.float32), r_ln0_g[...], r_ln0_b[...])   # (bt*N, D)

    # --- fused projection: stack [q rows; ref rows] against [Wq | Wr] -> one 2H-wide MXU pass
    x = jnp.concatenate([q, r], axis=0).astype(jnp.bfloat16)                 # (bt + bt*N, D)
    proj = jnp.dot(x, w_ref[...], preferred_element_type=jnp.float32)        # (bt + bt*N, 2H)

    q_proj = _layernorm_fast(proj[:bt, :H] + q_b[...], q_ln1_g[...], q_ln1_b[...])    # (bt, H)
    r_proj = _layernorm_fast(proj[bt:, H:] + r_b[...], r_ln1_g[...], r_ln1_b[...])    # (bt*N, H)

    # --- scores on the MXU: (bt*N, H) x (bt, H)^T -> (bt*N, bt), then per-batch diagonal select
    s_full = jax.lax.dot_general(r_proj, q_proj, (((1,), (1,)), ((), ())),
                                 preferred_element_type=jnp.float32)         # (bt*N, bt)
    s3 = s_full.reshape(bt, N, bt)
    sel = (jax.lax.broadcasted_iota(jnp.int32, (bt, N, bt), 0)
           == jax.lax.broadcasted_iota(jnp.int32, (bt, N, bt), 2))
    scores = jnp.sum(jnp.where(sel, s3, 0.0), axis=-1)                       # (bt, N)

    # --- fold 1/(tau*sqrt(H)) into a single multiply (equivalent to torch order for tau > 0)
    scores = scores * inv_scale

    if top_k is not None and 0 < top_k < N:
        # Iterative-max threshold (static tiny k) — k dependent XLU max reductions.
        # TODO(synk): tie handling differs from torch.topk (threshold keeps all tied scores).
        work = scores
        thr = None
        for _ in range(top_k):
            thr = jnp.max(work, axis=-1, keepdims=True)
            work = jnp.where(work >= thr, -jnp.inf, work)
        scores = jnp.where(scores >= thr, scores, -jnp.inf)

    # --- softmax; denominator reciprocal on the EUP
    w = scores - jnp.max(scores, axis=-1, keepdims=True)
    e = jnp.exp(w)
    w = e * pl.reciprocal(jnp.sum(e, axis=-1, keepdims=True), approx=True)

    # --- pred = sum(weights * ref_values)                                   # (bt, 1)
    out_ref[...] = jnp.sum(w * vals_ref[...], axis=-1, keepdims=True)


# --------------------------------- wrapper -----------------------------------

def regression_head(params, query_repr, ref_repr, ref_values, tau=1.0, top_k=None,
                    batch_tile=8):
    B, N, D = ref_repr.shape
    qp, rp = params["query"], params["ref"]
    H = qp["w"].shape[1]

    # batch tiling: `bt` whole batches per grid step (softmax over N stays intra-tile);
    # rows per tile are multiples of 8; fall back to a single whole-batch step otherwise.
    bt = batch_tile if (B % batch_tile == 0 and batch_tile % 8 == 0) else B
    G = B // bt

    # bf16 activation streaming (halves HBM bytes); upcast to f32 inside the kernel.
    q_in = query_repr.astype(jnp.bfloat16)                     # (B, D)
    r_in = ref_repr.reshape(B * N, D).astype(jnp.bfloat16)     # lane-dense (B*N, D) slab
    vals = ref_values.astype(jnp.float32)                      # (B, N)

    # runtime softmax scale in SMEM: folds tau and 1/sqrt(H); no recompiles per tau.
    inv_scale = jnp.asarray(1.0 / (float(tau) * math.sqrt(H)), jnp.float32).reshape(1, 1)

    # fused projection weight [Wq | Wr]: one full 2H-wide MXU pass per tile.
    w_cat = jnp.concatenate([qp["w"], rp["w"]], axis=1)        # (D, 2H) bf16

    def resident(a):  # params stay resident in VMEM across grid steps (constant index_map)
        return pl.BlockSpec(a.shape, lambda i: (0,) * a.ndim)

    kernel = functools.partial(regression_head_kernel, top_k)

    out = pl.pallas_call(
        kernel,
        grid=(G,),
        in_specs=[
            pl.BlockSpec(memory_space=pltpu.MemorySpace.SMEM),         # inv_scale scalar
            pl.BlockSpec((bt, D), lambda i: (i, 0)),                   # query rows
            pl.BlockSpec((bt * N, D), lambda i: (i, 0)),               # ref rows
            pl.BlockSpec((bt, N), lambda i: (i, 0)),                   # ref values
            resident(w_cat),
            resident(qp["ln0_g"]), resident(qp["ln0_b"]), resident(qp["b"]),
            resident(qp["ln1_g"]), resident(qp["ln1_b"]),
            resident(rp["ln0_g"]), resident(rp["ln0_b"]), resident(rp["b"]),
            resident(rp["ln1_g"]), resident(rp["ln1_b"]),
        ],
        out_specs=pl.BlockSpec((bt, 1), lambda i: (i, 0)),
        # TODO(synk): for very large B, emit a lane-dense (G, 1, bt) output instead of (B, 1)
        # to avoid masked last-dim-1 stores; negligible at these sizes.
        out_shape=jax.ShapeDtypeStruct((B, 1), jnp.float32),
        compiler_params=pltpu.CompilerParams(
            dimension_semantics=("parallel",),          # megacore split of the batch grid (v7x)
            vmem_limit_bytes=32 * 1024 * 1024),         # explicit; safe on v5e/v6e/v7x
    )(inv_scale, q_in, r_in, vals, w_cat,
      qp["ln0_g"], qp["ln0_b"], qp["b"], qp["ln1_g"], qp["ln1_b"],
      rp["ln0_g"], rp["ln0_b"], rp["b"], rp["ln1_g"], rp["ln1_b"])
    return out[:, 0]


# ------------------------------ parameter init --------------------------------
# TODO(synk): num_layers > 1 (extra Linear + GELU + Dropout blocks) not implemented;
#             the module default num_layers=1 (LN -> Linear -> LN) is covered.
#             Dropout is identity in eval mode anyway.

def init_params(key, input_size, hidden_size):
    kq, kr = jax.random.split(key)

    def proj(k, d_in, d_out):
        kw, kb, kg0, kb0, kg1, kb1 = jax.random.split(k, 6)
        w = jax.random.normal(kw, (d_in, d_out), jnp.float32) / math.sqrt(d_in)
        return {
            "ln0_g": 1.0 + 0.1 * jax.random.normal(kg0, (1, d_in), jnp.float32),
            "ln0_b": 0.1 * jax.random.normal(kb0, (1, d_in), jnp.float32),
            "w": w.astype(jnp.bfloat16),               # bf16 weight storage
            "b": 0.1 * jax.random.normal(kb, (1, d_out), jnp.float32),
            "ln1_g": 1.0 + 0.1 * jax.random.normal(kg1, (1, d_out), jnp.float32),
            "ln1_b": 0.1 * jax.random.normal(kb1, (1, d_out), jnp.float32),
        }

    return {"query": proj(kq, input_size, hidden_size),
            "ref": proj(kr, input_size, hidden_size)}


# ------------------------------ pure-JAX reference ----------------------------

def _layernorm_ref(x, g, b):
    mu = jnp.mean(x, axis=-1, keepdims=True)
    var = jnp.mean(jnp.square(x - mu), axis=-1, keepdims=True)
    return (x - mu) * jax.lax.rsqrt(var + LN_EPS) * g + b


def regression_head_ref(params, query_repr, ref_repr, ref_values, tau=1.0, top_k=None):
    # Match the kernel's bf16 activation storage (precision choice, not a semantic change).
    query_repr = query_repr.astype(jnp.bfloat16).astype(jnp.float32)
    ref_repr = ref_repr.astype(jnp.bfloat16).astype(jnp.float32)

    def apply_proj(p, x):
        x = _layernorm_ref(x, p["ln0_g"][0], p["ln0_b"][0])
        x = x @ p["w"].astype(jnp.float32) + p["b"][0]
        return _layernorm_ref(x, p["ln1_g"][0], p["ln1_b"][0])

    q = apply_proj(params["query"], query_repr)                 # (B, H)
    r = apply_proj(params["ref"], ref_repr)                     # (B, N, H)
    scores = jnp.einsum("bnh,bh->bn", r, q) / math.sqrt(r.shape[-1])
    if top_k is not None and 0 < top_k < scores.shape[1]:
        vals, idx = jax.lax.top_k(scores, top_k)
        masked = jnp.full_like(scores, -jnp.inf)
        scores = masked.at[jnp.arange(scores.shape[0])[:, None], idx].set(vals)
    w = scores / tau
    w = w - jnp.max(w, axis=-1, keepdims=True)
    w = jax.nn.softmax(w, axis=-1)
    return jnp.sum(w * ref_values, axis=-1)


# ----------------------------------- main --------------------------------------

if __name__ == "__main__":
    B, N, D, H = 16, 8, 128, 128         # lane-dense feature dims; B=16 -> 2 grid steps (bt=8)

    key = jax.random.PRNGKey(0)
    kq, kr, kv, kp = jax.random.split(key, 4)
    query_repr = jax.random.normal(kq, (B, D), jnp.float32)
    ref_repr = jax.random.normal(kr, (B, N, D), jnp.float32)
    ref_values = jax.random.normal(kv, (B, N), jnp.float32)
    params = init_params(kp, D, H)

    # no top-k
    pred = regression_head(params, query_repr, ref_repr, ref_values, tau=1.0, top_k=None)
    pred = jax.block_until_ready(pred)
    assert pred.shape == (B,) and pred.dtype == jnp.float32
    assert bool(jnp.all(jnp.isfinite(pred)))
    ref = regression_head_ref(params, query_repr, ref_repr, ref_values, tau=1.0, top_k=None)
    assert bool(jnp.allclose(pred, ref, atol=5e-2, rtol=5e-2)), (pred, ref)

    # with top-k and a non-trivial temperature
    pred_k = regression_head(params, query_repr, ref_repr, ref_values, tau=0.7, top_k=4)
    pred_k = jax.block_until_ready(pred_k)
    ref_k = regression_head_ref(params, query_repr, ref_repr, ref_values, tau=0.7, top_k=4)
    assert bool(jnp.allclose(pred_k, ref_k, atol=5e-2, rtol=5e-2)), (pred_k, ref_k)

    print("KERNEL_OK")
</pallas_src>

<mosaic_0001>
module attributes {stable_mosaic.version = 11 : i64} {
  func.func @regression_head_kernel(%arg0: i32, %arg1: memref<1x1xf32, #tpu.memory_space<smem>>, %arg2: memref<8x128xbf16, #tpu.memory_space<vmem>>, %arg3: memref<64x128xbf16, #tpu.memory_space<vmem>>, %arg4: memref<8x8xf32, #tpu.memory_space<vmem>>, %arg5: memref<128x256xbf16, #tpu.memory_space<vmem>>, %arg6: memref<1x128xf32, #tpu.memory_space<vmem>>, %arg7: memref<1x128xf32, #tpu.memory_space<vmem>>, %arg8: memref<1x128xf32, #tpu.memory_space<vmem>>, %arg9: memref<1x128xf32, #tpu.memory_space<vmem>>, %arg10: memref<1x128xf32, #tpu.memory_space<vmem>>, %arg11: memref<1x128xf32, #tpu.memory_space<vmem>>, %arg12: memref<1x128xf32, #tpu.memory_space<vmem>>, %arg13: memref<1x128xf32, #tpu.memory_space<vmem>>, %arg14: memref<1x128xf32, #tpu.memory_space<vmem>>, %arg15: memref<1x128xf32, #tpu.memory_space<vmem>>, %arg16: memref<8x1xf32, #tpu.memory_space<vmem>>) attributes {dimension_semantics = [#tpu.dimension_semantics<parallel>], iteration_bounds = array<i64: 2>, scalar_prefetch = 0 : i64, scratch_operands = 0 : i64, tpu.core_type = #tpu.core_type<tc>, window_params = [{transform_indices = @transform_0, window_bounds = array<i64: 1, 1>}, {transform_indices = @transform_1, window_bounds = array<i64: 8, 128>}, {transform_indices = @transform_2, window_bounds = array<i64: 64, 128>}, {transform_indices = @transform_3, window_bounds = array<i64: 8, 8>}, {pipeline_mode = #tpu.pipeline_mode<synchronous>, transform_indices = @transform_4, window_bounds = array<i64: 128, 256>}, {pipeline_mode = #tpu.pipeline_mode<synchronous>, transform_indices = @transform_5, window_bounds = array<i64: 1, 128>}, {pipeline_mode = #tpu.pipeline_mode<synchronous>, transform_indices = @transform_6, window_bounds = array<i64: 1, 128>}, {pipeline_mode = #tpu.pipeline_mode<synchronous>, transform_indices = @transform_7, window_bounds = array<i64: 1, 128>}, {pipeline_mode = #tpu.pipeline_mode<synchronous>, transform_indices = @transform_8, window_bounds = array<i64: 1, 128>}, {pipeline_mode = #tpu.pipeline_mode<synchronous>, transform_indices = @transform_9, window_bounds = array<i64: 1, 128>}, {pipeline_mode = #tpu.pipeline_mode<synchronous>, transform_indices = @transform_10, window_bounds = array<i64: 1, 128>}, {pipeline_mode = #tpu.pipeline_mode<synchronous>, transform_indices = @transform_11, window_bounds = array<i64: 1, 128>}, {pipeline_mode = #tpu.pipeline_mode<synchronous>, transform_indices = @transform_12, window_bounds = array<i64: 1, 128>}, {pipeline_mode = #tpu.pipeline_mode<synchronous>, transform_indices = @transform_13, window_bounds = array<i64: 1, 128>}, {pipeline_mode = #tpu.pipeline_mode<synchronous>, transform_indices = @transform_14, window_bounds = array<i64: 1, 128>}, {transform_indices = @transform_15, window_bounds = array<i64: 8, 1>}]} {
    %c0 = arith.constant 0 : index
    %c0_0 = arith.constant 0 : index
    %0 = memref.load %arg1[%c0, %c0_0] : memref<1x1xf32, #tpu.memory_space<smem>>
    %c0_1 = arith.constant 0 : index
    %c0_2 = arith.constant 0 : index
    %1 = vector.load %arg2[%c0_1, %c0_2] : memref<8x128xbf16, #tpu.memory_space<vmem>>, vector<8x128xbf16>
    %2 = arith.extf %1 : vector<8x128xbf16> to vector<8x128xf32>
    %c0_3 = arith.constant 0 : index
    %c0_4 = arith.constant 0 : index
    %3 = vector.load %arg6[%c0_3, %c0_4] : memref<1x128xf32, #tpu.memory_space<vmem>>, vector<1x128xf32>
    %c0_5 = arith.constant 0 : index
    %c0_6 = arith.constant 0 : index
    %4 = vector.load %arg7[%c0_5, %c0_6] : memref<1x128xf32, #tpu.memory_space<vmem>>, vector<1x128xf32>
    %cst = arith.constant dense<0.000000e+00> : vector<8xf32>
    %5 = vector.multi_reduction <add>, %2, %cst [1] : vector<8x128xf32> to vector<8xf32>
    %6 = vector.shape_cast %5 : vector<8xf32> to vector<8x1xf32>
    %cst_7 = arith.constant 1.280000e+02 : f32
    %7 = vector.broadcast %cst_7 : f32 to vector<8x1xf32>
    %8 = arith.divf %6, %7 : vector<8x1xf32>
    %9 = arith.mulf %2, %2 : vector<8x128xf32>
    %cst_8 = arith.constant dense<0.000000e+00> : vector<8xf32>
    %10 = vector.multi_reduction <add>, %9, %cst_8 [1] : vector<8x128xf32> to vector<8xf32>
    %11 = vector.shape_cast %10 : vector<8xf32> to vector<8x1xf32>
    %cst_9 = arith.constant 1.280000e+02 : f32
    %12 = vector.broadcast %cst_9 : f32 to vector<8x1xf32>
    %13 = arith.divf %11, %12 : vector<8x1xf32>
    %14 = arith.mulf %8, %8 : vector<8x1xf32>
    %15 = arith.subf %13, %14 : vector<8x1xf32>
    %cst_10 = arith.constant 0.000000e+00 : f32
    %16 = vector.broadcast %cst_10 : f32 to vector<8x1xf32>
    %17 = arith.maximumf %15, %16 : vector<8x1xf32>
    %18 = vector.broadcast %8 : vector<8x1xf32> to vector<8x128xf32>
    %19 = arith.subf %2, %18 : vector<8x128xf32>
    %cst_11 = arith.constant 9.99999974E-6 : f32
    %20 = vector.broadcast %cst_11 : f32 to vector<8x1xf32>
    %21 = arith.addf %17, %20 : vector<8x1xf32>
    %22 = math.rsqrt %21 : vector<8x1xf32>
    %23 = vector.broadcast %22 : vector<8x1xf32> to vector<8x128xf32>
    %24 = arith.mulf %19, %23 : vector<8x128xf32>
    %25 = vector.broadcast %3 : vector<1x128xf32> to vector<8x128xf32>
    %26 = arith.mulf %24, %25 : vector<8x128xf32>
    %27 = vector.broadcast %4 : vector<1x128xf32> to vector<8x128xf32>
    %28 = arith.addf %26, %27 : vector<8x128xf32>
    %c0_12 = arith.constant 0 : index
    %c0_13 = arith.constant 0 : index
    %29 = vector.load %arg3[%c0_12, %c0_13] : memref<64x128xbf16, #tpu.memory_space<vmem>>, vector<64x128xbf16>
    %30 = arith.extf %29 : vector<64x128xbf16> to vector<64x128xf32>
    %c0_14 = arith.constant 0 : index
    %c0_15 = arith.constant 0 : index
    %31 = vector.load %arg11[%c0_14, %c0_15] : memref<1x128xf32, #tpu.memory_space<vmem>>, vector<1x128xf32>
    %c0_16 = arith.constant 0 : index
    %c0_17 = arith.constant 0 : index
    %32 = vector.load %arg12[%c0_16, %c0_17] : memref<1x128xf32, #tpu.memory_space<vmem>>, vector<1x128xf32>
    %cst_18 = arith.constant dense<0.000000e+00> : vector<64xf32>
    %33 = vector.multi_reduction <add>, %30, %cst_18 [1] : vector<64x128xf32> to vector<64xf32>
    %34 = vector.shape_cast %33 : vector<64xf32> to vector<64x1xf32>
    %cst_19 = arith.constant 1.280000e+02 : f32
    %35 = vector.broadcast %cst_19 : f32 to vector<64x1xf32>
    %36 = arith.divf %34, %35 : vector<64x1xf32>
    %37 = arith.mulf %30, %30 : vector<64x128xf32>
    %cst_20 = arith.constant dense<0.000000e+00> : vector<64xf32>
    %38 = vector.multi_reduction <add>, %37, %cst_20 [1] : vector<64x128xf32> to vector<64xf32>
    %39 = vector.shape_cast %38 : vector<64xf32> to vector<64x1xf32>
    %cst_21 = arith.constant 1.280000e+02 : f32
    %40 = vector.broadcast %cst_21 : f32 to vector<64x1xf32>
    %41 = arith.divf %39, %40 : vector<64x1xf32>
    %42 = arith.mulf %36, %36 : vector<64x1xf32>
    %43 = arith.subf %41, %42 : vector<64x1xf32>
    %cst_22 = arith.constant 0.000000e+00 : f32
    %44 = vector.broadcast %cst_22 : f32 to vector<64x1xf32>
    %45 = arith.maximumf %43, %44 : vector<64x1xf32>
    %46 = vector.broadcast %36 : vector<64x1xf32> to vector<64x128xf32>
    %47 = arith.subf %30, %46 : vector<64x128xf32>
    %cst_23 = arith.constant 9.99999974E-6 : f32
    %48 = vector.broadcast %cst_23 : f32 to vector<64x1xf32>
    %49 = arith.addf %45, %48 : vector<64x1xf32>
    %50 = math.rsqrt %49 : vector<64x1xf32>
    %51 = vector.broadcast %50 : vector<64x1xf32> to vector<64x128xf32>
    %52 = arith.mulf %47, %51 : vector<64x128xf32>
    %53 = vector.broadcast %31 : vector<1x128xf32> to vector<64x128xf32>
    %54 = arith.mulf %52, %53 : vector<64x128xf32>
    %55 = vector.broadcast %32 : vector<1x128xf32> to vector<64x128xf32>
    %56 = arith.addf %54, %55 : vector<64x128xf32>
    %57 = tpu.concatenate %28, %56 in 0 : vector<8x128xf32>, vector<64x128xf32> -> vector<72x128xf32>
    %58 = arith.truncf %57 : vector<72x128xf32> to vector<72x128xbf16>
    %c0_24 = arith.constant 0 : index
    %c0_25 = arith.constant 0 : index
    %59 = vector.load %arg5[%c0_24, %c0_25] : memref<128x256xbf16, #tpu.memory_space<vmem>>, vector<128x256xbf16>
    %cst_26 = arith.constant dense<0.000000e+00> : vector<72x256xf32>
    %60 = tpu.matmul %58, %59, %cst_26 {dimension_numbers = #tpu.dot_dimension_numbers<[1], [0], [0], [1], [0, 0, 1, 1], [], []>} : vector<72x128xbf16>, vector<128x256xbf16>, vector<72x256xf32> -> vector<72x256xf32>
    %61 = vector.extract_strided_slice %60 {offsets = [0, 0], sizes = [8, 128], strides = [1, 1]} : vector<72x256xf32> to vector<8x128xf32>
    %c0_27 = arith.constant 0 : index
    %c0_28 = arith.constant 0 : index
    %62 = vector.load %arg8[%c0_27, %c0_28] : memref<1x128xf32, #tpu.memory_space<vmem>>, vector<1x128xf32>
    %63 = vector.broadcast %62 : vector<1x128xf32> to vector<8x128xf32>
    %64 = arith.addf %61, %63 : vector<8x128xf32>
    %c0_29 = arith.constant 0 : index
    %c0_30 = arith.constant 0 : index
    %65 = vector.load %arg9[%c0_29, %c0_30] : memref<1x128xf32, #tpu.memory_space<vmem>>, vector<1x128xf32>
    %c0_31 = arith.constant 0 : index
    %c0_32 = arith.constant 0 : index
    %66 = vector.load %arg10[%c0_31, %c0_32] : memref<1x128xf32, #tpu.memory_space<vmem>>, vector<1x128xf32>
    %cst_33 = arith.constant dense<0.000000e+00> : vector<8xf32>
    %67 = vector.multi_reduction <add>, %64, %cst_33 [1] : vector<8x128xf32> to vector<8xf32>
    %68 = vector.shape_cast %67 : vector<8xf32> to vector<8x1xf32>
    %cst_34 = arith.constant 1.280000e+02 : f32
    %69 = vector.broadcast %cst_34 : f32 to vector<8x1xf32>
    %70 = arith.divf %68, %69 : vector<8x1xf32>
    %71 = arith.mulf %64, %64 : vector<8x128xf32>
    %cst_35 = arith.constant dense<0.000000e+00> : vector<8xf32>
    %72 = vector.multi_reduction <add>, %71, %cst_35 [1] : vector<8x128xf32> to vector<8xf32>
    %73 = vector.shape_cast %72 : vector<8xf32> to vector<8x1xf32>
    %cst_36 = arith.constant 1.280000e+02 : f32
    %74 = vector.broadcast %cst_36 : f32 to vector<8x1xf32>
    %75 = arith.divf %73, %74 : vector<8x1xf32>
    %76 = arith.mulf %70, %70 : vector<8x1xf32>
    %77 = arith.subf %75, %76 : vector<8x1xf32>
    %cst_37 = arith.constant 0.000000e+00 : f32
    %78 = vector.broadcast %cst_37 : f32 to vector<8x1xf32>
    %79 = arith.maximumf %77, %78 : vector<8x1xf32>
    %80 = vector.broadcast %70 : vector<8x1xf32> to vector<8x128xf32>
    %81 = arith.subf %64, %80 : vector<8x128xf32>
    %cst_38 = arith.constant 9.99999974E-6 : f32
    %82 = vector.broadcast %cst_38 : f32 to vector<8x1xf32>
    %83 = arith.addf %79, %82 : vector<8x1xf32>
    %84 = math.rsqrt %83 : vector<8x1xf32>
    %85 = vector.broadcast %84 : vector<8x1xf32> to vector<8x128xf32>
    %86 = arith.mulf %81, %85 : vector<8x128xf32>
    %87 = vector.broadcast %65 : vector<1x128xf32> to vector<8x128xf32>
    %88 = arith.mulf %86, %87 : vector<8x128xf32>
    %89 = vector.broadcast %66 : vector<1x128xf32> to vector<8x128xf32>
    %90 = arith.addf %88, %89 : vector<8x128xf32>
    %91 = vector.extract_strided_slice %60 {offsets = [8, 128], sizes = [64, 128], strides = [1, 1]} : vector<72x256xf32> to vector<64x128xf32>
    %c0_39 = arith.constant 0 : index
    %c0_40 = arith.constant 0 : index
    %92 = vector.load %arg13[%c0_39, %c0_40] : memref<1x128xf32, #tpu.memory_space<vmem>>, vector<1x128xf32>
    %93 = vector.broadcast %92 : vector<1x128xf32> to vector<64x128xf32>
    %94 = arith.addf %91, %93 : vector<64x128xf32>
    %c0_41 = arith.constant 0 : index
    %c0_42 = arith.constant 0 : index
    %95 = vector.load %arg14[%c0_41, %c0_42] : memref<1x128xf32, #tpu.memory_space<vmem>>, vector<1x128xf32>
    %c0_43 = arith.constant 0 : index
    %c0_44 = arith.constant 0 : index
    %96 = vector.load %arg15[%c0_43, %c0_44] : memref<1x128xf32, #tpu.memory_space<vmem>>, vector<1x128xf32>
    %cst_45 = arith.constant dense<0.000000e+00> : vector<64xf32>
    %97 = vector.multi_reduction <add>, %94, %cst_45 [1] : vector<64x128xf32> to vector<64xf32>
    %98 = vector.shape_cast %97 : vector<64xf32> to vector<64x1xf32>
    %cst_46 = arith.constant 1.280000e+02 : f32
    %99 = vector.broadcast %cst_46 : f32 to vector<64x1xf32>
    %100 = arith.divf %98, %99 : vector<64x1xf32>
    %101 = arith.mulf %94, %94 : vector<64x128xf32>
    %cst_47 = arith.constant dense<0.000000e+00> : vector<64xf32>
    %102 = vector.multi_reduction <add>, %101, %cst_47 [1] : vector<64x128xf32> to vector<64xf32>
    %103 = vector.shape_cast %102 : vector<64xf32> to vector<64x1xf32>
    %cst_48 = arith.constant 1.280000e+02 : f32
    %104 = vector.broadcast %cst_48 : f32 to vector<64x1xf32>
    %105 = arith.divf %103, %104 : vector<64x1xf32>
    %106 = arith.mulf %100, %100 : vector<64x1xf32>
    %107 = arith.subf %105, %106 : vector<64x1xf32>
    %cst_49 = arith.constant 0.000000e+00 : f32
    %108 = vector.broadcast %cst_49 : f32 to vector<64x1xf32>
    %109 = arith.maximumf %107, %108 : vector<64x1xf32>
    %110 = vector.broadcast %100 : vector<64x1xf32> to vector<64x128xf32>
    %111 = arith.subf %94, %110 : vector<64x128xf32>
    %cst_50 = arith.constant 9.99999974E-6 : f32
    %112 = vector.broadcast %cst_50 : f32 to vector<64x1xf32>
    %113 = arith.addf %109, %112 : vector<64x1xf32>
    %114 = math.rsqrt %113 : vector<64x1xf32>
    %115 = vector.broadcast %114 : vector<64x1xf32> to vector<64x128xf32>
    %116 = arith.mulf %111, %115 : vector<64x128xf32>
    %117 = vector.broadcast %95 : vector<1x128xf32> to vector<64x128xf32>
    %118 = arith.mulf %116, %117 : vector<64x128xf32>
    %119 = vector.broadcast %96 : vector<1x128xf32> to vector<64x128xf32>
    %120 = arith.addf %118, %119 : vector<64x128xf32>
    %cst_51 = arith.constant dense<0.000000e+00> : vector<64x8xf32>
    %121 = tpu.matmul %120, %90, %cst_51 {dimension_numbers = #tpu.dot_dimension_numbers<[1], [1], [0], [0], [0, 0, 1, 0], [], []>} : vector<64x128xf32>, vector<8x128xf32>, vector<64x8xf32> -> vector<64x8xf32>
    %122 = vector.shape_cast %121 : vector<64x8xf32> to vector<8x8x8xf32>
    %123 = tpu.iota {dimensions = array<i32: 0>} : vector<8x8x8xi32>
    %124 = tpu.iota {dimensions = array<i32: 2>} : vector<8x8x8xi32>
    %125 = arith.cmpi eq, %123, %124 : vector<8x8x8xi32>
    %cst_52 = arith.constant 0.000000e+00 : f32
    %126 = vector.broadcast %cst_52 : f32 to vector<8x8x8xf32>
    %127 = arith.select %125, %122, %126 : vector<8x8x8xi1>, vector<8x8x8xf32>
    %cst_53 = arith.constant dense<0.000000e+00> : vector<8x8xf32>
    %128 = vector.multi_reduction <add>, %127, %cst_53 [2] : vector<8x8x8xf32> to vector<8x8xf32>
    %129 = vector.broadcast %0 : f32 to vector<8x8xf32>
    %130 = arith.mulf %128, %129 : vector<8x8xf32>
    %cst_54 = arith.constant dense<0xFF800000> : vector<8xf32>
    %131 = vector.multi_reduction <maximumf>, %130, %cst_54 [1] : vector<8x8xf32> to vector<8xf32>
    %132 = vector.shape_cast %131 : vector<8xf32> to vector<8x1xf32>
    %133 = vector.broadcast %132 : vector<8x1xf32> to vector<8x8xf32>
    %134 = arith.subf %130, %133 : vector<8x8xf32>
    %135 = math.exp %134 : vector<8x8xf32>
    %cst_55 = arith.constant dense<0.000000e+00> : vector<8xf32>
    %136 = vector.multi_reduction <add>, %135, %cst_55 [1] : vector<8x8xf32> to vector<8xf32>
    %137 = vector.shape_cast %136 : vector<8xf32> to vector<8x1xf32>
    %138 = tpu.reciprocal %137 {approx = true} : vector<8x1xf32> -> vector<8x1xf32>
    %139 = vector.broadcast %138 : vector<8x1xf32> to vector<8x8xf32>
    %140 = arith.mulf %135, %139 : vector<8x8xf32>
    %c0_56 = arith.constant 0 : index
    %c0_57 = arith.constant 0 : index
    %141 = vector.load %arg4[%c0_56, %c0_57] : memref<8x8xf32, #tpu.memory_space<vmem>>, vector<8x8xf32>
    %142 = arith.mulf %140, %141 : vector<8x8xf32>
    %cst_58 = arith.constant dense<0.000000e+00> : vector<8xf32>
    %143 = vector.multi_reduction <add>, %142, %cst_58 [1] : vector<8x8xf32> to vector<8xf32>
    %144 = vector.shape_cast %143 : vector<8xf32> to vector<8x1xf32>
    %c0_59 = arith.constant 0 : index
    %c0_60 = arith.constant 0 : index
    %145 = vector.load %arg16[%c0_59, %c0_60] : memref<8x1xf32, #tpu.memory_space<vmem>>, vector<8x1xf32>
    tpu.vector_store %arg16[%c0_59, %c0_60], %144 {strides = array<i32>} : memref<8x1xf32, #tpu.memory_space<vmem>>, vector<8x1xf32>,
    return
  }
  func.func @transform_0(%arg0: i32) -> (i32, i32) {
    %c0_i32 = arith.constant 0 : i32
    %c0_i32_0 = arith.constant 0 : i32
    %c0_i32_1 = arith.constant 0 : i32
    return %c0_i32, %c0_i32_0 : i32, i32
  }
  func.func @transform_1(%arg0: i32) -> (i32, i32) {
    %c0_i32 = arith.constant 0 : i32
    %c0_i32_0 = arith.constant 0 : i32
    return %arg0, %c0_i32 : i32, i32
  }
  func.func @transform_2(%arg0: i32) -> (i32, i32) {
    %c0_i32 = arith.constant 0 : i32
    %c0_i32_0 = arith.constant 0 : i32
    return %arg0, %c0_i32 : i32, i32
  }
  func.func @transform_3(%arg0: i32) -> (i32, i32) {
    %c0_i32 = arith.constant 0 : i32
    %c0_i32_0 = arith.constant 0 : i32
    return %arg0, %c0_i32 : i32, i32
  }
  func.func @transform_4(%arg0: i32) -> (i32, i32) {
    %c0_i32 = arith.constant 0 : i32
    %c0_i32_0 = arith.constant 0 : i32
    %c0_i32_1 = arith.constant 0 : i32
    return %c0_i32, %c0_i32_0 : i32, i32
  }
  func.func @transform_5(%arg0: i32) -> (i32, i32) {
    %c0_i32 = arith.constant 0 : i32
    %c0_i32_0 = arith.constant 0 : i32
    %c0_i32_1 = arith.constant 0 : i32
    return %c0_i32, %c0_i32_0 : i32, i32
  }
  func.func @transform_6(%arg0: i32) -> (i32, i32) {
    %c0_i32 = arith.constant 0 : i32
    %c0_i32_0 = arith.constant 0 : i32
    %c0_i32_1 = arith.constant 0 : i32
    return %c0_i32, %c0_i32_0 : i32, i32
  }
  func.func @transform_7(%arg0: i32) -> (i32, i32) {
    %c0_i32 = arith.constant 0 : i32
    %c0_i32_0 = arith.constant 0 : i32
    %c0_i32_1 = arith.constant 0 : i32
    return %c0_i32, %c0_i32_0 : i32, i32
  }
  func.func @transform_8(%arg0: i32) -> (i32, i32) {
    %c0_i32 = arith.constant 0 : i32
    %c0_i32_0 = arith.constant 0 : i32
    %c0_i32_1 = arith.constant 0 : i32
    return %c0_i32, %c0_i32_0 : i32, i32
  }
  func.func @transform_9(%arg0: i32) -> (i32, i32) {
    %c0_i32 = arith.constant 0 : i32
    %c0_i32_0 = arith.constant 0 : i32
    %c0_i32_1 = arith.constant 0 : i32
    return %c0_i32, %c0_i32_0 : i32, i32
  }
  func.func @transform_10(%arg0: i32) -> (i32, i32) {
    %c0_i32 = arith.constant 0 : i32
    %c0_i32_0 = arith.constant 0 : i32
    %c0_i32_1 = arith.constant 0 : i32
    return %c0_i32, %c0_i32_0 : i32, i32
  }
  func.func @transform_11(%arg0: i32) -> (i32, i32) {
    %c0_i32 = arith.constant 0 : i32
    %c0_i32_0 = arith.constant 0 : i32
    %c0_i32_1 = arith.constant 0 : i32
    return %c0_i32, %c0_i32_0 : i32, i32
  }
  func.func @transform_12(%arg0: i32) -> (i32, i32) {
    %c0_i32 = arith.constant 0 : i32
    %c0_i32_0 = arith.constant 0 : i32
    %c0_i32_1 = arith.constant 0 : i32
    return %c0_i32, %c0_i32_0 : i32, i32
  }
  func.func @transform_13(%arg0: i32) -> (i32, i32) {
    %c0_i32 = arith.constant 0 : i32
    %c0_i32_0 = arith.constant 0 : i32
    %c0_i32_1 = arith.constant 0 : i32
    return %c0_i32, %c0_i32_0 : i32, i32
  }
  func.func @transform_14(%arg0: i32) -> (i32, i32) {
    %c0_i32 = arith.constant 0 : i32
    %c0_i32_0 = arith.constant 0 : i32
    %c0_i32_1 = arith.constant 0 : i32
    return %c0_i32, %c0_i32_0 : i32, i32
  }
  func.func @transform_15(%arg0: i32) -> (i32, i32) {
    %c0_i32 = arith.constant 0 : i32
    %c0_i32_0 = arith.constant 0 : i32
    return %arg0, %c0_i32 : i32, i32
  }
}

</mosaic_0001>

<bundles_post_ra>
// kernel: tpu_custom_call.1
= control target key start
LH: loop header
LB: loop body
LE: loop exit
PB: predicated region body
PF: predicated region fallthrough
CT: control target
= control target key end

     0   :  { %s2716_s0 = inlined_call_operand.<no memory space> [shape: f32[1,1], index: 0, kind: input, shape index: {}]   ;;  %s2717_s1 = inlined_call_operand.vmem [shape: bf16[16,128], index: 1, kind: input, shape index: {}]   ;;  %s2718_s2 = inlined_call_operand.hbm [shape: bf16[128,128], index: 2, kind: input, shape index: {}]   ;;  %s2719_s3 = inlined_call_operand.vmem [shape: f32[16,8], index: 3, kind: input, shape index: {}]   ;;  %s2720_s4 = inlined_call_operand.hbm [shape: bf16[128,256], index: 4, kind: input, shape index: {}]   ;;  %s2721_s5 = inlined_call_operand.vmem [shape: f32[1,128], index: 5, kind: input, shape index: {}]   ;;  %s2722_s6 = inlined_call_operand.vmem [shape: f32[1,128], index: 6, kind: input, shape index: {}]   ;;  %s2723_s7 = inlined_call_operand.vmem [shape: f32[1,128], index: 7, kind: input, shape index: {}]   ;;  %s2724_s8 = inlined_call_operand.vmem [shape: f32[1,128], index: 8, kind: input, shape index: {}]   ;;  %s2725_s9 = inlined_call_operand.vmem [shape: f32[1,128], index: 9, kind: input, shape index: {}]   ;;  %s2726_s10 = inlined_call_operand.vmem [shape: f32[1,128], index: 10, kind: input, shape index: {}]   ;;  %s2727_s11 = inlined_call_operand.vmem [shape: f32[1,128], index: 11, kind: input, shape index: {}]   ;;  %s2728_s12 = inlined_call_operand.vmem [shape: f32[1,128], index: 12, kind: input, shape index: {}]   ;;  %s2729_s13 = inlined_call_operand.vmem [shape: f32[1,128], index: 13, kind: input, shape index: {}]   ;;  %s2730_s14 = inlined_call_operand.vmem [shape: f32[1,128], index: 14, kind: input, shape index: {}]   ;;  %s2731_s15 = inlined_call_operand.vmem [shape: f32[16,1], index: 15, kind: output, shape index: {}]  }
   0x1   :  { %2737 = sst [smem:[#allocation10_spill]] %s2719_s3 }
   0x2   :  { %2738 = sst [smem:[#allocation11_spill]] %s2725_s9 }
   0x3   :  { %2739 = sst [smem:[#allocation12_spill]] %s2729_s13 }
   0x4   :  { %2740 = sst [smem:[#allocation13_spill]] %s2730_s14 }
   0x5   :  { %2741 = sst [smem:[#allocation14_spill]] %s2731_s15 }
   0x6   :  { %20 = sst [smem:[#allocation2]] %s2716_s0 }
   0x7   :  { %21 = vsyncpa [#allocation4], 0 }
   0x8   :  { %23 = vsyncpa [#allocation4 + $0x1], 0 }
   0x9   :  { %24 = vsyncpa [#allocation6], 0  ;;  %s2199_s20 = smov 0   ;;  %s2201_s21 = smov 0  }
   0xa   :  { %s2203_s22 = smov 0   ;;  %s2205_s23 = smov 0  }
   0xb LB: > { %s2218_s0 = sadd.s32 4294967295, %s2107_s23   ;;  %p97_p0 = scmp.ne.s32.totalorder %s2099_s21, %s2095_s20  ;;  %s2107_s23 = sphi %s2205_s23, %s2756_s23   ;;  %s2103_s22 = sphi %s2203_s22, %s2759_s22   ;;  %s2099_s21 = sphi %s2201_s21, %s2758_s21   ;;  %s2095_s20 = sphi %s2199_s20, %s2757_s20  }
   0xc   : > { %p2734_p1 = scmp.eq.s32.totalorder %s2218_s0, 0  ;;  %p1781_p2 = scmp.ge.s32.totalorder %s2107_s23, 1 }
   0xd   : > { %p391_p3 = scmp.lt.s32.totalorder %s2107_s23, 3  ;;  %s2109_s26 = smov [#allocation5]  }
   0xe   : > { %p2226_p4 = por %p2734_p1, %p97_p0  ;;  %s406_s27 = sshll.u32 %s2109_s26, 4  ;;  %s407_s27 = int_to_ptr.vmem [resolvable:$true] %s406_s27 }
   0xf   : > { %p2230_p5 = pnand %p1781_p2, %p391_p3  ;;  %s2243_s29 = sadd.s32 1, %s2107_s23  }
  0x10   : > { %s2742_s24 = scalar_select %p2226_p4, 1, 0 }
  0x11   : > { %s2743_s25 = scalar_select %p2230_p5, 1, 0 }
  0x12   : > { %p1886_p6 = pneg %p2230_p5  ;;  %2745 = sst [smem:[#allocation9_spill]] %s2243_s29 }
  0x13   : > { %s84_s30 = sadd.s32 1, %s2103_s22  ;;  %s81_s16 = ssub.s32 %s2107_s23, %s2243_s29 }
  0x14   : > { %p2238_p7 = pnand %p1886_p6, %p2734_p1  ;;  %s2026_s17 = scalar_lea.vmem %s407_s27, 2048 }
  0x15   : > { %p2027_p9 = scmp.ne.s32.totalorder %s407_s27, %s2026_s17  ;;  %p2034_p12 = scmp.lt.s32.totalorder %s407_s27, %s407_s27 }
  0x16   : > { %p2017_p8 = pneg %p2238_p7  ;;  %p2035_p13 = scmp.lt.s32.totalorder %s2026_s17, %s2026_s17 }
  0x18   : > { %p2029_p10 = pnand %p2027_p9, %p2017_p8  ;;  %p2036_p0 = por %p2035_p13, %p2034_p12 }
  0x1a   : > { %p2030_p11 = pneg %p2029_p10 }
  0x1c   : > { %p2037_p2 = pnand %p2036_p0, %p2030_p11 }
  0x1e   : > { %2040 = shalt.err (!%p2037_p2)
}
  0x1f   : > { %s2110_s18 = smov 128   ;;  %s2111_s19 = smov 8  }
  0x20   : > { %1889 = dma.hbm_to_vmem [thread:$0]  (!%p2238_p7), %s2720_s4, 2048, %s407_s27, [#allocation6], %s2110_s18, %s2110_s18, %s2111_s19  }
  0x21   : > { %p82_p3 = scmp.eq.s32.totalorder %s81_s16, 0  ;;  %p91_p6 = scmp.ne.s32.totalorder %s2103_s22, %s2099_s21 }
  0x22   : > { %p92_p8 = scmp.eq.s32.totalorder %s2107_s23, 0  ;;  %p1895_p9 = scmp.lt.s32.totalorder %s2107_s23, 2 }
  0x23   : > { %s2260_s17 = scalar_select %p82_p3, %s2103_s22, %s84_s30  }
  0x24   : > { %p93_p10 = por %p92_p8, %p91_p6  ;;  %s457_s29 = sand.u32 1, %s2103_s22  }
  0x25   : > { %s1784_s15 = sshll.u32 %s457_s29, 5  ;;  %s1821_s3 = sshll.u32 %s2107_s23, 9 }
  0x26   : > { %s2267_s9 = scalar_lea.hbm %s2718_s2, %s1821_s3  ;;  %s461_s28 = scalar_lea.vmem [#allocation3], %s1784_s15 }
  0x27   : > { %s468_s27 = sshll.u32 %s461_s28, 4  ;;  %p2271_p7 = pnand %p1895_p9, %p93_p10  ;;  %s2269_s27 = int_to_ptr.vmem [resolvable:$true] %s468_s27 }
  0x28   : > { %s2275_s30 = scalar_lea.sflag [#allocation4], %s457_s29  ;;  %s2041_s23 = scalar_lea.hbm %s2267_s9, 512 }
  0x29   : > { %p2042_p11 = scmp.ne.s32.totalorder %s2267_s9, %s2041_s23  ;;  %p2043_p12 = pneg %p2271_p7 }
  0x2a   : > { %s2046_s14 = scalar_lea.hbm %s2718_s2, 1024  ;;  %p2047_p2 = scmp.lt.s32.totalorder %s2267_s9, %s2718_s2 }
  0x2b   : > { %p2044_p13 = pnand %p2043_p12, %p2042_p11  ;;  %p2048_p3 = scmp.lt.s32.totalorder %s2046_s14, %s2041_s23 }
  0x2d   : > { %p2045_p0 = pneg %p2044_p13  ;;  %p2049_p6 = por %p2048_p3, %p2047_p2 }
  0x2f   : > { %p2050_p8 = pnand %p2049_p6, %p2045_p0 }
  0x31   : > { %2053 = shalt.err (!%p2050_p8)
}
  0x32   : > { %s2054_s29 = scalar_lea.vmem %s2269_s27, 512  ;;  %s2112_s19 = smov [#allocation3]  }
  0x33   : > { %p2055_p9 = scmp.ne.s32.totalorder %s2269_s27, %s2054_s29  ;;  %s2059_s20 = sshll.u32 %s2112_s19, 4  ;;  %s2060_s20 = int_to_ptr.vmem [resolvable:$false] %s2059_s20 }
  0x34   : > { %s2061_s26 = scalar_lea.vmem %s2060_s20, 1024  ;;  %p2062_p13 = scmp.lt.s32.totalorder %s2269_s27, %s2060_s20 }
  0x35   : > { %p2057_p10 = pnand %p2055_p9, %p2043_p12  ;;  %p2063_p1 = scmp.lt.s32.totalorder %s2061_s26, %s2054_s29 }
  0x37   : > { %p2058_p11 = pneg %p2057_p10  ;;  %p2064_p4 = por %p2063_p1, %p2062_p13 }
  0x39   : > { %p2065_p5 = pnand %p2064_p4, %p2058_p11 }
  0x3b   : > { %2068 = shalt.err (!%p2065_p5)
}
  0x3c   : > { %s2113_s28 = smov 64   ;;  %s2114_s23 = smov 4  }
  0x3d   : > { %1893 = dma.hbm_to_vmem [thread:$0]  (!%p2271_p7), %s2267_s9, 512, %s2269_s27, %s2275_s30, %s2113_s28, %s2113_s28, %s2114_s23  }
  0x3e   : > { %p2747_p12 = scmp.ne.s32.totalorder %s2743_s25, 0 }
  0x3f   : > { %s489_s3 = sand.u32 (!%p2747_p12), 1, %s2099_s21   ;;  %p2748_p1 = scmp.ne.s32.totalorder (!%p2747_p12), %s2742_s24, 0 }
  0x40   : > { %487 = sbr.rel (%p2747_p12) target bundleno = 1768 (0x6e8), region = 80  ;;  %s1788_s13 = sshll.u32 (!%p2747_p12), %s489_s3, 5 }
  0x41   : > { %s490_s14 = scalar_lea.sflag (!%p2747_p12), [#allocation4], %s489_s3  ;;  %s2299_s15 = scalar_lea.vmem (!%p2747_p12), [#allocation3], %s1788_s13 }
  0x45   : > { %2086 = dma.done.wait (%p2748_p1), %s490_s14, 512  }
  0x46   : > { %2088 = vsyncadd (%p2748_p1), %s490_s14, 4294966784  ;;  %p2749_p4 = scmp.eq.s32.totalorder %s2218_s0, 0 }
  0x48   : > { %2090 = dma.done.wait (%p2749_p4), [#allocation6], 2048   ;;  %p2750_p5 = pmov %p2749_p4 }
  0x49   : > { %p551_p7 = scmp.lt.s32.totalorder %s2218_s0, 1  ;;  %v1823_v1 = vld [vmem:[%s2299_s15] sm:$0xff]   ;;  %v1838_v5 = vld [vmem:[%s2299_s15 + $0x8] sm:$0xff]   ;;  %v1839_v11 = vld [vmem:[%s2299_s15 + $0x10] sm:$0xff]   ;;  %v2115_v39 = vmov 0   ;;  %s2752_s18 = sld [smem:[#allocation12_spill]] }
  0x4a   : > { %2092 = vsyncadd (%p2750_p5), [#allocation6], 4294965248  ;;  %v2320_v3 = vunpack.c.l.bf16 %v1823_v1  ;;  %v2329_v7 = vunpack.c.h.bf16 %v1823_v1  ;;  %v2331_v8 = vunpack.c.l.bf16 %v1838_v5  ;;  %v2340_v12 = vunpack.c.h.bf16 %v1838_v5  ;;  %v1937_v13 = vld [vmem:[#allocation5 + $0x74] ss:$8 sps:$4 sm:$0xff]   ;;  %v1939_v14 = vld [vmem:[#allocation5 + $0x70] ss:$8 sps:$4 sm:$0xff]   ;;  %890 = vmatprep.mubr.bf16.mxu0 %v2115_v39  ;;  %922 = vmatprep.mubr.bf16.mxu1 %v2115_v39 }
  0x4b   : > { %s2761_s0 = smov (!%p551_p7, %s2218_s0), 1  ;;  %v2342_v15 = vunpack.c.l.bf16 %v1839_v11  ;;  %858 = vmatprep.subr.bf16.mxu0 %v1937_v13  ;;  %1864 = vmatprep.subr.bf16.mxu1 %v1937_v13  ;;  %v1940_v17 = vld [vmem:[#allocation5 + $0x64] ss:$8 sps:$4 sm:$0xff]   ;;  %v1942_v18 = vld [vmem:[#allocation5 + $0x60] ss:$8 sps:$4 sm:$0xff]   ;;  %v1840_v20 = vld [vmem:[%s2299_s15 + $0x18] sm:$0xff]   ;;  %v2351_v21 = vunpack.c.h.bf16 %v1839_v11 }
  0x4c   : > { %s1790_s9 = sshll.u32 %s2761_s0, 2  ;;  %v641_v6 = vmul.f32 %v2320_v3, %v2320_v3  ;;  %v642_v9 = vmul.f32 %v2329_v7, %v2329_v7  ;;  %v643_v10 = vmul.f32 %v2331_v8, %v2331_v8  ;;  %859 = vmatpush1.bf16.msra.mxu0 %v1939_v14  ;;  %v644_v16 = vmul.f32 %v2340_v12, %v2340_v12  ;;  %v1943_v22 = vld [vmem:[#allocation5 + $0x54] ss:$8 sps:$4 sm:$0xff]   ;;  %v1945_v24 = vld [vmem:[#allocation5 + $0x50] ss:$8 sps:$4 sm:$0xff]   ;;  %s2753_s20 = sld [smem:[#allocation13_spill]] }
  0x4d   : > { %s554_s24 = scalar_lea.vmem %s2717_s1, %s1790_s9  ;;  %1872 = vmatpush1.bf16.msra.mxu1 %v1939_v14  ;;  %v645_v19 = vmul.f32 %v2342_v15, %v2342_v15  ;;  %860 = vmatprep.subr.bf16.mxu0 %v1940_v17  ;;  %v2353_v23 = vunpack.c.l.bf16 %v1840_v20  ;;  %v646_v25 = vmul.f32 %v2351_v21, %v2351_v21  ;;  %v1946_v26 = vld [vmem:[#allocation5 + $0x44] ss:$8 sps:$4 sm:$0xff]   ;;  %v2361_v28 = vunpack.c.h.bf16 %v1840_v20  ;;  %v1948_v29 = vld [vmem:[#allocation5 + $0x40] ss:$8 sps:$4 sm:$0xff]   ;;  %v1949_v30 = vld [vmem:[#allocation5 + $0x34] ss:$8 sps:$4 sm:$0xff]  }
  0x4e   : > { %v566_v0 = vld [vmem:[%s554_s24] sm:$0xf]  ;;  %1865 = vmatprep.subr.bf16.mxu1 %v1940_v17  ;;  %v1951_v32 = vld [vmem:[#allocation5 + $0x30] ss:$8 sps:$4 sm:$0xff]   ;;  %v1952_v33 = vld [vmem:[#allocation5 + $0x24] ss:$8 sps:$4 sm:$0xff]   ;;  %1936 = vset.pattern.permute.xlu0 %v2115_v39 }
  0x4f   : > { %v2318_v2 = vunpack.c.l.bf16 %v566_v0  ;;  %v647_v27 = vmul.f32 %v2353_v23, %v2353_v23  ;;  %v648_v31 = vmul.f32 %v2361_v28, %v2361_v28  ;;  %v1954_v34 = vld [vmem:[#allocation5 + $0x20] ss:$8 sps:$4 sm:$0xff]   ;;  %v1955_v35 = vld [vmem:[#allocation5 + $0x14] ss:$8 sps:$4 sm:$0xff]   ;;  %v1957_v36 = vld [vmem:[#allocation5 + $0x10] ss:$8 sps:$4 sm:$0xff]   ;;  %1935 = vset.pattern.permute.xlu1 %v2115_v39 }
  0x50   : > { %861 = vmatpush1.bf16.msra.mxu0 %v1942_v18  ;;  %v1958_v37 = vld [vmem:[#allocation5 + $0x4] ss:$8 sps:$4 sm:$0xff]   ;;  %v1960_v38 = vld [vmem:[#allocation5] ss:$8 sps:$4 sm:$0xff]   ;;  %s2751_s24 = sld [smem:[#allocation11_spill]]  ;;  %vm1248_vm1 = vcmask 64512  }
  0x51   : > { %570 = vadd.xlane.f32.xlu0 %v2318_v2  ;;  %v574_v4 = vmul.f32 %v2318_v2, %v2318_v2  ;;  %1873 = vmatpush1.bf16.msra.mxu1 %v1942_v18  ;;  %s565_s26 = sld [smem:[#allocation2]]  ;;  %vm1322_vm9 = vcmask 1041409   ;;  %vm1324_vm10 = vcmask 1042434   ;;  %vm1326_vm11 = vcmask 1043459   ;;  %s1791_s28 = sshll.u32 %s2761_s0, 3 }
  0x52   : > { %862 = vmatprep.subr.bf16.mxu0 %v1943_v22  ;;  %1866 = vmatprep.subr.bf16.mxu1 %v1943_v22  ;;  %vm1328_vm12 = vcmask 1044484   ;;  %vm1330_vm13 = vcmask 1045509   ;;  %vm1332_vm14 = vcmask 1046534   ;;  %vm1334_vm15 = vcmask 1047559   ;;  %s2754_s13 = sld [smem:[#allocation10_spill]] }
  0x53   : > { %575 = vadd.xlane.f32.xlu1 %v574_v4  ;;  %s2755_s25 = sld [smem:[#allocation14_spill]] }
  0x54   : > { %863 = vmatpush1.bf16.msra.mxu0 %v1945_v24 }
  0x55   : > { %617 = vadd.xlane.f32.xlu0 %v2320_v3  ;;  %1874 = vmatpush1.bf16.msra.mxu1 %v1945_v24 }
  0x56   : > { %864 = vmatprep.subr.bf16.mxu0 %v1946_v26  ;;  %1867 = vmatprep.subr.bf16.mxu1 %v1946_v26 }
  0x57   : > { %649 = vadd.xlane.f32.xlu1 %v641_v6 }
  0x58   : > { %865 = vmatpush1.bf16.msra.mxu0 %v1948_v29  ;;  %s559_s14 = scalar_lea.vmem %s2754_s13, %s1791_s28 }
  0x59   : > { %619 = vadd.xlane.f32.xlu0 %v2329_v7  ;;  %1875 = vmatpush1.bf16.msra.mxu1 %v1948_v29  ;;  %s563_s27 = scalar_lea.vmem %s2755_s25, %s1791_s28 }
  0x5a   : > { %866 = vmatprep.subr.bf16.mxu0 %v1949_v30  ;;  %1868 = vmatprep.subr.bf16.mxu1 %v1949_v30 }
  0x5b   : > { %621 = vadd.xlane.f32.xlu1 %v2331_v8 }
  0x5c   : > { %867 = vmatpush1.bf16.msra.mxu0 %v1951_v32 }
  0x5d   : > { %651 = vadd.xlane.f32.xlu0 %v642_v9  ;;  %1876 = vmatpush1.bf16.msra.mxu1 %v1951_v32 }
  0x5e   : > { %868 = vmatprep.subr.bf16.mxu0 %v1952_v33  ;;  %1869 = vmatprep.subr.bf16.mxu1 %v1952_v33 }
  0x5f   : > { %653 = vadd.xlane.f32.xlu1 %v643_v10 }
  0x60   : > { %869 = vmatpush1.bf16.msra.mxu0 %v1954_v34 }
  0x61   : > { %623 = vadd.xlane.f32.xlu0 %v2340_v12  ;;  %1877 = vmatpush1.bf16.msra.mxu1 %v1954_v34 }
  0x62   : > { %870 = vmatprep.subr.bf16.mxu0 %v1955_v35  ;;  %1870 = vmatprep.subr.bf16.mxu1 %v1955_v35 }
  0x63   : > { %625 = vadd.xlane.f32.xlu1 %v2342_v15 }
  0x64   : > { %871 = vmatpush1.bf16.msra.mxu0 %v1957_v36 }
  0x65   : > { %655 = vadd.xlane.f32.xlu0 %v644_v16  ;;  %1878 = vmatpush1.bf16.msra.mxu1 %v1957_v36 }
  0x66   : > { %872 = vmatprep.subr.bf16.mxu0 %v1958_v37  ;;  %1871 = vmatprep.subr.bf16.mxu1 %v1958_v37 }
  0x67   : > { %657 = vadd.xlane.f32.xlu1 %v645_v19 }
  0x68   : > { %873 = vmatpush1.bf16.msra.mxu0 %v1960_v38 }
  0x69   : > { %627 = vadd.xlane.f32.xlu0 %v2351_v21  ;;  %1879 = vmatpush1.bf16.msra.mxu1 %v1960_v38 }
  0x6b   : > { %629 = vadd.xlane.f32.xlu1 %v2353_v23 }
  0x6d   : > { %659 = vadd.xlane.f32.xlu0 %v646_v25 }
  0x6f   : > { %661 = vadd.xlane.f32.xlu1 %v647_v27 }
  0x71   : > { %631 = vadd.xlane.f32.xlu0 %v2361_v28 }
  0x73   : > { %663 = vadd.xlane.f32.xlu1 %v648_v31 }
  0xda   : > { %v571_v40 = vpop.xlane.xlu0 %570 }
  0xdb   : > { %v573_v41 = vmul.f32 0.0078125, %v571_v40  ;;  %v1793_v40 = vld [vmem:[%s2721_s5] ss:$0 sm:$0xff] }
  0xdc   : > { %v576_v42 = vpop.xlane.xlu1 %575 }
  0xdd   : > { %v578_v43 = vmul.f32 %v573_v41, %v573_v41  ;;  %v577_v44 = vmul.f32 0.0078125, %v576_v42  ;;  %v581_v29 = vsub.f32 %v2318_v2, %v573_v41 }
  0xde   : > { %v618_v45 = vpop.xlane.xlu0 %617 }
  0xdf   : > { %v579_v46 = vsub.f32 %v577_v44, %v578_v43  ;;  %v633_v47 = vmul.f32 0.0078125, %v618_v45  ;;  %v2400_v44 = vld [vmem:[%s2726_s10] ss:$0 sm:$0xff] }
  0xe0   : > { %v650_v48 = vpop.xlane.xlu1 %649 }
  0xe1   : > { %v580_v49 = vmax.f32 %v579_v46, 0.0  ;;  %v673_v50 = vmul.f32 %v633_v47, %v633_v47  ;;  %v665_v51 = vmul.f32 0.0078125, %v650_v48  ;;  %v697_v36 = vsub.f32 %v2320_v3, %v633_v47 }
  0xe2   : > { %v620_v52 = vpop.xlane.xlu0 %619 }
  0xe3   : > { %v582_v53 = vadd.f32 1e-05, %v580_v49  ;;  %v681_v54 = vsub.f32 %v665_v51, %v673_v50  ;;  %v2370_v55 = vmul.f32 0.0078125, %v620_v52  ;;  %v2407_v50 = vld [vmem:[%s2727_s11] ss:$0 sm:$0xff] }
  0xe4   : > { %v622_v56 = vpop.xlane.xlu1 %621 }
  0xe5   : > { %1961 = vrsqrt.f32 %v582_v53  ;;  %v689_v57 = vmax.f32 %v681_v54, 0.0  ;;  %v2372_v58 = vmul.f32 0.0078125, %v622_v56  ;;  %v674_v61 = vmul.f32 %v2370_v55, %v2370_v55  ;;  %v1794_v53 = vld [vmem:[%s2722_s6] ss:$0 sm:$0xff] }
  0xe6   : > { %v652_v59 = vpop.xlane.xlu0 %651 }
  0xe7   : > { %v705_v60 = vadd.f32 1e-05, %v689_v57  ;;  %v666_v62 = vmul.f32 0.0078125, %v652_v59  ;;  %v675_v0 = vmul.f32 %v2372_v58, %v2372_v58 }
  0xe8   : > { %v654_v63 = vpop.xlane.xlu1 %653 }
  0xe9   : > { %1963 = vrsqrt.f32 %v705_v60  ;;  %v682_v1 = vsub.f32 %v666_v62, %v674_v61  ;;  %v667_v4 = vmul.f32 0.0078125, %v654_v63  ;;  %v698_v63 = vsub.f32 %v2329_v7, %v2370_v55 }
  0xea   : > { %v624_v5 = vpop.xlane.xlu0 %623 }
  0xeb   : > { %v690_v6 = vmax.f32 %v682_v1, 0.0  ;;  %v683_v9 = vsub.f32 %v667_v4, %v675_v0  ;;  %v2378_v10 = vmul.f32 0.0078125, %v624_v5  ;;  %v699_v4 = vsub.f32 %v2331_v8, %v2372_v58 }
  0xec   : > { %v626_v11 = vpop.xlane.xlu1 %625 }
  0xed   : > { %v706_v13 = vadd.f32 1e-05, %v690_v6  ;;  %v691_v14 = vmax.f32 %v683_v9, 0.0  ;;  %v2380_v16 = vmul.f32 0.0078125, %v626_v11  ;;  %v676_v19 = vmul.f32 %v2378_v10, %v2378_v10 }
  0xee   : > { %v656_v17 = vpop.xlane.xlu0 %655  ;;  %v700_v55 = vsub.f32 %v2340_v12, %v2378_v10 }
  0xef   : > { %1965 = vrsqrt.f32 %v706_v13  ;;  %v707_v18 = vadd.f32 1e-05, %v691_v14  ;;  %v668_v20 = vmul.f32 0.0078125, %v656_v17  ;;  %v677_v24 = vmul.f32 %v2380_v16, %v2380_v16 }
  0xf0   : > { %v658_v22 = vpop.xlane.xlu1 %657 }
  0xf1   : > { %1967 = vrsqrt.f32 %v707_v18  ;;  %v684_v25 = vsub.f32 %v668_v20, %v676_v19  ;;  %v669_v26 = vmul.f32 0.0078125, %v658_v22 }
  0xf2   : > { %v1962_v27 = vpop.eup %1961  ;;  %v628_v30 = vpop.xlane.xlu0 %627 }
  0xf3   : > { %v692_v31 = vmax.f32 %v684_v25, 0.0  ;;  %v685_v32 = vsub.f32 %v669_v26, %v677_v24  ;;  %v2387_v33 = vmul.f32 0.0078125, %v628_v30  ;;  %v584_v35 = vmul.f32 %v1962_v27, %v581_v29 }
  0xf4   : > { %v630_v34 = vpop.xlane.xlu1 %629  ;;  %v701_v27 = vsub.f32 %v2342_v15, %v2380_v16 }
  0xf5   : > { %v708_v37 = vadd.f32 1e-05, %v692_v31  ;;  %v693_v38 = vmax.f32 %v685_v32, 0.0  ;;  %v678_v43 = vmul.f32 %v2387_v33, %v2387_v33  ;;  %v2395_v2 = vmul.f32 0.0078125, %v630_v34 }
  0xf6   : > { %v1964_v42 = vpop.eup %1963  ;;  %v660_v41 = vpop.xlane.xlu0 %659  ;;  %v591_v49 = vmul.f32 %v1793_v40, %v584_v35  ;;  %v702_v10 = vsub.f32 %v2351_v21, %v2387_v33 }
  0xf7   : > { %1969 = vrsqrt.f32 %v708_v37  ;;  %v709_v3 = vadd.f32 1e-05, %v693_v38  ;;  %v670_v45 = vmul.f32 0.0078125, %v660_v41  ;;  %v721_v46 = vmul.f32 %v1964_v42, %v697_v36 }
  0xf8   : > { %v679_v47 = vmul.f32 %v2395_v2, %v2395_v2  ;;  %v662_v48 = vpop.xlane.xlu1 %661  ;;  %v598_v1 = vadd.f32 %v1794_v53, %v591_v49  ;;  %v703_v16 = vsub.f32 %v2353_v23, %v2395_v2 }
  0xf9   : > { %1971 = vrsqrt.f32 %v709_v3  ;;  %v686_v51 = vsub.f32 %v670_v45, %v678_v43  ;;  %v671_v52 = vmul.f32 0.0078125, %v662_v48  ;;  %v735_v54 = vmul.f32 %v2400_v44, %v721_v46 }
  0xfa   : > { %v632_v56 = vpop.xlane.xlu0 %631 }
  0xfb   : > { %v694_v57 = vmax.f32 %v686_v51, 0.0  ;;  %v687_v59 = vsub.f32 %v671_v52, %v679_v47  ;;  %v640_v60 = vmul.f32 0.0078125, %v632_v56  ;;  %v749_v61 = vadd.f32 %v2407_v50, %v735_v54 }
  0xfc   : > { %v1966_v62 = vpop.eup %1965  ;;  %v664_v0 = vpop.xlane.xlu1 %663 }
  0xfd   : > { %v710_v5 = vadd.f32 1e-05, %v694_v57  ;;  %v695_v6 = vmax.f32 %v687_v59, 0.0  ;;  %v680_v9 = vmul.f32 %v640_v60, %v640_v60  ;;  %v672_v13 = vmul.f32 0.0078125, %v664_v0 }
  0xfe   : > { %v1968_v11 = vpop.eup %1967  ;;  %v757_v14 = vpack.c.bf16 %v749_v61, %v598_v1  ;;  %v722_v17 = vmul.f32 %v1966_v62, %v698_v63  ;;  %v704_v21 = vsub.f32 %v2361_v28, %v640_v60 }
  0xff   : > { %1973 = vrsqrt.f32 %v710_v5  ;;  %v711_v18 = vadd.f32 1e-05, %v695_v6  ;;  %v723_v19 = vmul.f32 %v1968_v11, %v699_v4  ;;  %v688_v20 = vsub.f32 %v672_v13, %v680_v9 }
 0x100   : > { %891 = vmatmul.mubr.bf16.vlgmr.msra.gmra.mxu0 %v757_v14  ;;  %v736_v22 = vmul.f32 %v2400_v44, %v722_v17 }
 0x101   : > { %1975 = vrsqrt.f32 %v711_v18  ;;  %898 = vmatprep.mubr.bf16.mxu0 %v2115_v39  ;;  %v737_v7 = vmul.f32 %v2400_v44, %v723_v19  ;;  %v696_v8 = vmax.f32 %v688_v20, 0.0 }
 0x102   : > { %v750_v58 = vadd.f32 %v2407_v50, %v736_v22 }
 0x103   : > { %v751_v24 = vadd.f32 %v2407_v50, %v737_v7  ;;  %v712_v26 = vadd.f32 1e-05, %v696_v8 }
 0x104   : > { %v1970_v25 = vpop.eup %1969 }
 0x105   : > { %v758_v29 = vpack.c.bf16 %v751_v24, %v750_v58  ;;  %v724_v30 = vmul.f32 %v1970_v25, %v700_v55  ;;  %1977 = vrsqrt.f32 %v712_v26 }
 0x106   : > { %v1972_v31 = vpop.eup %1971 }
 0x107   : > { %v725_v32 = vmul.f32 %v1972_v31, %v701_v27  ;;  %v738_v34 = vmul.f32 %v2400_v44, %v724_v30 }
 0x108   : > { %899 = vmatmul.mubr.bf16.gmra.mxu0 %v758_v29 }
 0x109   : > { %906 = vmatprep.mubr.bf16.mxu0 %v2115_v39  ;;  %v739_v12 = vmul.f32 %v2400_v44, %v725_v32  ;;  %v752_v35 = vadd.f32 %v2407_v50, %v738_v34 }
 0x10b   : > { %v753_v36 = vadd.f32 %v2407_v50, %v739_v12 }
 0x10c   : > { %v1974_v15 = vpop.eup %1973 }
 0x10d   : > { %v759_v37 = vpack.c.bf16 %v753_v36, %v752_v35  ;;  %v726_v38 = vmul.f32 %v1974_v15, %v702_v10 }
 0x10e   : > { %v1976_v40 = vpop.eup %1975 }
 0x10f   : > { %v727_v42 = vmul.f32 %v1976_v40, %v703_v16  ;;  %v740_v43 = vmul.f32 %v2400_v44, %v726_v38 }
 0x110   : > { %907 = vmatmul.mubr.bf16.gmra.mxu0 %v759_v37 }
 0x111   : > { %914 = vmatprep.mubr.bf16.mxu0 %v2115_v39  ;;  %v741_v41 = vmul.f32 %v2400_v44, %v727_v42  ;;  %v754_v3 = vadd.f32 %v2407_v50, %v740_v43  ;;  %v1813_v39 = vld [vmem:[%s2723_s7] ss:$0 sm:$0xff] }
 0x112   : > { %v1978_v33 = vpop.eup %1977 }
 0x113   : > { %v755_v45 = vadd.f32 %v2407_v50, %v741_v41  ;;  %v728_v46 = vmul.f32 %v1978_v33, %v704_v21 }
 0x115   : > { %v760_v23 = vpack.c.bf16 %v755_v45, %v754_v3  ;;  %v742_v2 = vmul.f32 %v2400_v44, %v728_v46  ;;  %v1816_v44 = vld [vmem:[%s2728_s12] ss:$0 sm:$0xff] }
 0x117   : > { %v756_v47 = vadd.f32 %v2407_v50, %v742_v2 }
 0x118   : > { %915 = vmatmul.mubr.bf16.gmra.mxu0 %v760_v23 }
 0x119   : > { %v761_v48 = vpack.c.bf16 %v756_v47, %v756_v47  ;;  %v1814_v47 = vld [vmem:[%s2724_s8] ss:$0 sm:$0xff] }
 0x11b   : > { %923 = vmatmul.mubr.bf16.vlgmr.msra.gmra.mxu1 %v761_v48 }
 0x1c0   : > { %v892_v49 = vpop.f32.mrf.mxu0 }
 0x1c1   : > { %v2447_v28 = vadd.f32 %v1813_v39, %v892_v49  ;;  %v1815_v49 = vld [vmem:[%s2751_s24] ss:$0 sm:$0xff] }
 0x1c2   : > { %v894_v51 = vpop.f32.mrf.mxu0 }
 0x1c3   : > { %940 = vadd.xlane.f32.xlu0 %v2447_v28  ;;  %v943_v52 = vmul.f32 %v2447_v28, %v2447_v28 }
 0x1c4   : > { %v895_v53 = vpop.f32.mrf.mxu0 }
 0x1c5   : > { %944 = vadd.xlane.f32.xlu1 %v943_v52 }
 0x1c6   : > { %v896_v50 = vpop.f32.mrf.mxu0 }
 0x1c7   : > { %v2455_v54 = vadd.f32 %v1816_v44, %v896_v50 }
 0x1c8   : > { %v900_v56 = vpop.f32.mrf.mxu0 }
 0x1c9   : > { %985 = vadd.xlane.f32.xlu0 %v2455_v54  ;;  %v1009_v59 = vmul.f32 %v2455_v54, %v2455_v54 }
 0x1ca   : > { %v901_v57 = vpop.f32.mrf.mxu0 }
 0x1cb   : > { %v2476_v55 = vadd.f32 %v1816_v44, %v901_v57 }
 0x1cc   : > { %v903_v60 = vpop.f32.mrf.mxu0 }
 0x1cd   : > { %1017 = vadd.xlane.f32.xlu0 %v1009_v59  ;;  %v1010_v24 = vmul.f32 %v2476_v55, %v2476_v55 }
 0x1ce   : > { %v904_v61 = vpop.f32.mrf.mxu0 }
 0x1cf   : > { %v2460_v62 = vadd.f32 %v1816_v44, %v904_v61  ;;  %v2512_v61 = vld [vmem:[%s2752_s18] ss:$0 sm:$0xff] }
 0x1d0   : > { %v908_v63 = vpop.f32.mrf.mxu0 }
 0x1d1   : > { %989 = vadd.xlane.f32.xlu0 %v2460_v62  ;;  %v1011_v1 = vmul.f32 %v2460_v62, %v2460_v62 }
 0x1d2   : > { %v909_v0 = vpop.f32.mrf.mxu0 }
 0x1d3   : > { %v2483_v25 = vadd.f32 %v1816_v44, %v909_v0 }
 0x1d4   : > { %v911_v4 = vpop.f32.mrf.mxu0 }
 0x1d5   : > { %1021 = vadd.xlane.f32.xlu0 %v1011_v1  ;;  %v1012_v26 = vmul.f32 %v2483_v25, %v2483_v25 }
 0x1d6   : > { %v912_v5 = vpop.f32.mrf.mxu0 }
 0x1d7   : > { %v2465_v6 = vadd.f32 %v1816_v44, %v912_v5 }
 0x1d8   : > { %v916_v9 = vpop.f32.mrf.mxu0 }
 0x1d9   : > { %993 = vadd.xlane.f32.xlu0 %v2465_v6  ;;  %v1013_v13 = vmul.f32 %v2465_v6, %v2465_v6  ;;  %v2517_v9 = vld [vmem:[%s2753_s20] ss:$0 sm:$0xff] }
 0x1da   : > { %v917_v11 = vpop.f32.mrf.mxu0 }
 0x1db   : > { %v924_v17 = vpop.f32.mrf.mxu1  ;;  %v2488_v27 = vadd.f32 %v1816_v44, %v917_v11 }
 0x1dc   : > { %v919_v14 = vpop.f32.mrf.mxu0 }
 0x1dd   : > { %1025 = vadd.xlane.f32.xlu0 %v1013_v13  ;;  %v925_v19 = vpop.f32.mrf.mxu1  ;;  %v1014_v29 = vmul.f32 %v2488_v27, %v2488_v27 }
 0x1de   : > { %v920_v18 = vpop.f32.mrf.mxu0  ;;  %v2472_v22 = vadd.f32 %v1816_v44, %v925_v19 }
 0x1df   : > { %v2470_v20 = vadd.f32 %v1816_v44, %v920_v18  ;;  %v927_v7 = vpop.f32.mrf.mxu1 }
 0x1e0   : > { %999 = vadd.xlane.f32.xlu1 %v2472_v22  ;;  %v1016_v30 = vmul.f32 %v2472_v22, %v2472_v22 }
 0x1e1   : > { %997 = vadd.xlane.f32.xlu0 %v2470_v20  ;;  %v928_v8 = vpop.f32.mrf.mxu1  ;;  %v1015_v58 = vmul.f32 %v2470_v20, %v2470_v20 }
 0x1e4   : > { %987 = vadd.xlane.f32.xlu1 %v2476_v55 }
 0x1e5   : > { %1029 = vadd.xlane.f32.xlu0 %v1015_v58 }
 0x1e8   : > { %1019 = vadd.xlane.f32.xlu1 %v1010_v24 }
 0x1ec   : > { %991 = vadd.xlane.f32.xlu1 %v2483_v25 }
 0x1f0   : > { %1023 = vadd.xlane.f32.xlu1 %v1012_v26 }
 0x1f4   : > { %995 = vadd.xlane.f32.xlu1 %v2488_v27 }
 0x1f8   : > { %1027 = vadd.xlane.f32.xlu1 %v1014_v29 }
 0x1fc   : > { %1031 = vadd.xlane.f32.xlu1 %v1016_v30 }
 0x24c   : > { %v941_v31 = vpop.xlane.xlu0 %940 }
 0x24d   : > { %v942_v32 = vmul.f32 0.0078125, %v941_v31 }
 0x24e   : > { %v945_v34 = vpop.xlane.xlu1 %944 }
 0x24f   : > { %v947_v12 = vmul.f32 %v942_v32, %v942_v32  ;;  %v946_v10 = vmul.f32 0.0078125, %v945_v34  ;;  %v950_v46 = vsub.f32 %v2447_v28, %v942_v32 }
 0x251   : > { %v948_v35 = vsub.f32 %v946_v10, %v947_v12 }
 0x252   : > { %v986_v36 = vpop.xlane.xlu0 %985 }
 0x253   : > { %v949_v15 = vmax.f32 %v948_v35, 0.0  ;;  %v1001_v16 = vmul.f32 0.0078125, %v986_v36 }
 0x255   : > { %v951_v37 = vadd.f32 1e-05, %v949_v15  ;;  %v1041_v40 = vmul.f32 %v1001_v16, %v1001_v16  ;;  %v1065_v57 = vsub.f32 %v2455_v54, %v1001_v16 }
 0x256   : > { %v1018_v38 = vpop.xlane.xlu0 %1017 }
 0x257   : > { %1979 = vrsqrt.f32 %v951_v37  ;;  %v1033_v42 = vmul.f32 0.0078125, %v1018_v38 }
 0x259   : > { %v1049_v43 = vsub.f32 %v1033_v42, %v1041_v40 }
 0x25a   : > { %v990_v41 = vpop.xlane.xlu0 %989 }
 0x25b   : > { %v1057_v21 = vmax.f32 %v1049_v43, 0.0  ;;  %v2496_v2 = vmul.f32 0.0078125, %v990_v41 }
 0x25d   : > { %v1073_v33 = vadd.f32 1e-05, %v1057_v21  ;;  %v1043_v53 = vmul.f32 %v2496_v2, %v2496_v2 }
 0x25e   : > { %v1022_v3 = vpop.xlane.xlu0 %1021 }
 0x25f   : > { %1981 = vrsqrt.f32 %v1073_v33  ;;  %v1035_v39 = vmul.f32 0.0078125, %v1022_v3 }
 0x261   : > { %v1051_v28 = vsub.f32 %v1035_v39, %v1043_v53 }
 0x262   : > { %v994_v45 = vpop.xlane.xlu0 %993 }
 0x263   : > { %v2507_v59 = vmul.f32 0.0078125, %v994_v45  ;;  %v1059_v63 = vmax.f32 %v1051_v28, 0.0 }
 0x264   : > { %v1980_v23 = vpop.eup %1979 }
 0x265   : > { %v953_v48 = vmul.f32 %v1980_v23, %v950_v46  ;;  %v1045_v54 = vmul.f32 %v2507_v59, %v2507_v59  ;;  %v1075_v13 = vadd.f32 1e-05, %v1059_v63 }
 0x266   : > { %v1026_v51 = vpop.xlane.xlu0 %1025 }
 0x267   : > { %v960_v52 = vmul.f32 %v1814_v47, %v953_v48  ;;  %v1037_v0 = vmul.f32 0.0078125, %v1026_v51  ;;  %1983 = vrsqrt.f32 %v1075_v13  ;;  %v1067_v47 = vsub.f32 %v2460_v62, %v2496_v2 }
 0x268   : > { %v1069_v2 = vsub.f32 %v2465_v6, %v2507_v59 }
 0x269   : > { %v967_v44 = vadd.f32 %v1815_v49, %v960_v52  ;;  %v1000_v50 = vpop.xlane.xlu1 %999  ;;  %v1053_v14 = vsub.f32 %v1037_v0, %v1045_v54 }
 0x26a   : > { %v998_v60 = vpop.xlane.xlu0 %997  ;;  %v1008_v45 = vmul.f32 0.0078125, %v1000_v50 }
 0x26b   : > { %1850 = vmatprep.subr.mxu1 %v967_v44  ;;  %v2523_v58 = vmul.f32 0.0078125, %v998_v60  ;;  %v1061_v26 = vmax.f32 %v1053_v14, 0.0 }
 0x26c   : > { %v1982_v56 = vpop.eup %1981  ;;  %1851 = vmatpush3.xpose.msra.mxu1 %v967_v44  ;;  %v1048_v51 = vmul.f32 %v1008_v45, %v1008_v45 }
 0x26d   : > { %v988_v1 = vpop.xlane.xlu1 %987  ;;  %v1089_v4 = vmul.f32 %v1982_v56, %v1065_v57  ;;  %v1047_v34 = vmul.f32 %v2523_v58, %v2523_v58  ;;  %v1077_v10 = vadd.f32 1e-05, %v1061_v26  ;;  %v1071_v6 = vsub.f32 %v2470_v20, %v2523_v58 }
 0x26e   : > { %v1002_v5 = vmul.f32 0.0078125, %v988_v1  ;;  %v1030_v19 = vpop.xlane.xlu0 %1029 }
 0x26f   : > { %v1103_v11 = vmul.f32 %v2512_v61, %v1089_v4  ;;  %v1039_v29 = vmul.f32 0.0078125, %v1030_v19 }
 0x270   : > { %v1042_v7 = vmul.f32 %v1002_v5, %v1002_v5  ;;  %v1066_v52 = vsub.f32 %v2476_v55, %v1002_v5 }
 0x271   : > { %v1020_v17 = vpop.xlane.xlu1 %1019  ;;  %v1117_v18 = vadd.f32 %v2517_v9, %v1103_v11  ;;  %v1055_v35 = vsub.f32 %v1039_v29, %v1047_v34  ;;  %v1072_v29 = vsub.f32 %v2472_v22, %v1008_v45 }
 0x272   : > { %v1034_v8 = vmul.f32 0.0078125, %v1020_v17 }
 0x273   : > { %1852 = vmatprep.mubr.f32.mxu1 %v1117_v18  ;;  %v1063_v38 = vmax.f32 %v1055_v35, 0.0 }
 0x274   : > { %v1050_v24 = vsub.f32 %v1034_v8, %v1042_v7  ;;  %v1984_v3 = vpop.eup %1983 }
 0x275   : > { %v992_v30 = vpop.xlane.xlu1 %991  ;;  %v1079_v21 = vadd.f32 1e-05, %v1063_v38  ;;  %v1091_v49 = vmul.f32 %v1984_v3, %v1067_v47 }
 0x276   : > { %v1058_v31 = vmax.f32 %v1050_v24, 0.0  ;;  %v1004_v32 = vmul.f32 0.0078125, %v992_v30 }
 0x277   : > { %v1105_v50 = vmul.f32 %v2512_v61, %v1091_v49 }
 0x278   : > { %v1074_v12 = vadd.f32 1e-05, %v1058_v31  ;;  %v1044_v15 = vmul.f32 %v1004_v32, %v1004_v32  ;;  %v1068_v54 = vsub.f32 %v2483_v25, %v1004_v32 }
 0x279   : > { %v1024_v36 = vpop.xlane.xlu1 %1023  ;;  %v1119_v55 = vadd.f32 %v2517_v9, %v1105_v50 }
 0x27a   : > { %1985 = vrsqrt.f32 %v1074_v12  ;;  %v1036_v16 = vmul.f32 0.0078125, %v1024_v36  ;;  %v1230_v12 = vlaneseq }
 0x27b   : > { %1987 = vrsqrt.f32 %v1077_v10 }
 0x27c   : > { %v1052_v37 = vsub.f32 %v1036_v16, %v1044_v15  ;;  %v1231_v10 = vand.u32 127, %v1230_v12 }
 0x27d   : > { %v996_v40 = vpop.xlane.xlu1 %995 }
 0x27e   : > { %v1060_v42 = vmax.f32 %v1052_v37, 0.0  ;;  %v1006_v43 = vmul.f32 0.0078125, %v996_v40  ;;  %vm1233_vm0 = vcmp.eq.s32.totalorder %v1231_v10, 1  ;;  %vm1232_vm2 = vcmp.eq.s32.totalorder %v1231_v10, 0 }
 0x27f   : > { %vm1235_vm3 = vcmp.eq.s32.totalorder %v1231_v10, 3  ;;  %vm1234_vm4 = vcmp.eq.s32.totalorder %v1231_v10, 2  ;;  %vm1237_vm5 = vcmp.eq.s32.totalorder %v1231_v10, 5  ;;  %vm1236_vm6 = vcmp.eq.s32.totalorder %v1231_v10, 4 }
 0x280   : > { %v1076_v41 = vadd.f32 1e-05, %v1060_v42  ;;  %v1046_v46 = vmul.f32 %v1006_v43, %v1006_v43  ;;  %v1070_v25 = vsub.f32 %v2488_v27, %v1006_v43  ;;  %vm1239_vm7 = vcmp.eq.s32.totalorder %v1231_v10, 7 }
 0x281   : > { %v1028_v33 = vpop.xlane.xlu1 %1027  ;;  %vm1238_vm8 = vcmp.eq.s32.totalorder %v1231_v10, 6 }
 0x282   : > { %1989 = vrsqrt.f32 %v1076_v41  ;;  %v1038_v23 = vmul.f32 0.0078125, %v1028_v33 }
 0x283   : > { %1991 = vrsqrt.f32 %v1079_v21 }
 0x284   : > { %v1054_v48 = vsub.f32 %v1038_v23, %v1046_v46 }
 0x285   : > { %v1032_v39 = vpop.xlane.xlu1 %1031 }
 0x286   : > { %v1062_v53 = vmax.f32 %v1054_v48, 0.0  ;;  %v1040_v44 = vmul.f32 0.0078125, %v1032_v39 }
 0x287   : > { %v1986_v28 = vpop.eup %1985 }
 0x288   : > { %v1078_v56 = vadd.f32 1e-05, %v1062_v53  ;;  %v1056_v57 = vsub.f32 %v1040_v44, %v1048_v51  ;;  %v1090_v60 = vmul.f32 %v1986_v28, %v1066_v52  ;;  %v1988_v63 = vpop.eup %1987  ;;  %v2559_v53 = vshrl.u32 %v1230_v12, 7 }
 0x289   : > { %v1093_v5 = vmul.f32 %v1988_v63, %v1069_v2  ;;  %v1273_v28 = vstv %s565_s26 }
 0x28a   : > { %1993 = vrsqrt.f32 %v1078_v56  ;;  %v1064_v0 = vmax.f32 %v1056_v57, 0.0  ;;  %v1104_v62 = vmul.f32 %v2512_v61, %v1090_v60  ;;  %v2562_v50 = vsub.s32 %v1231_v10, %v2559_v53 }
 0x28b   : > { %v1107_v14 = vmul.f32 %v2512_v61, %v1093_v5  ;;  %v2590_v12 = vsub.s32 3, %v2559_v53 }
 0x28c   : > { %v1080_v1 = vadd.f32 1e-05, %v1064_v0  ;;  %v1118_v4 = vadd.f32 %v2517_v9, %v1104_v62 }
 0x28d   : > { %v1121_v19 = vadd.f32 %v2517_v9, %v1107_v14 }
 0x28e   : > { %1995 = vrsqrt.f32 %v1080_v1  ;;  %1853 = vmatmul.mubr.f32.vlgmr.msra.gmra.mxu1 %v1118_v4 }
 0x28f   : > { %v1990_v11 = vpop.eup %1989  ;;  %1855 = vmatprep.mubr.f32.mxu1 %v1119_v55 }
 0x290   : > { %v1092_v13 = vmul.f32 %v1990_v11, %v1068_v54  ;;  %v1992_v17 = vpop.eup %1991 }
 0x291   : > { %v1095_v7 = vmul.f32 %v1992_v17, %v1071_v6 }
 0x292   : > { %v1106_v18 = vmul.f32 %v2512_v61, %v1092_v13 }
 0x293   : > { %v1109_v26 = vmul.f32 %v2512_v61, %v1095_v7 }
 0x294   : > { %v1120_v59 = vadd.f32 %v2517_v9, %v1106_v18 }
 0x295   : > { %v1123_v32 = vadd.f32 %v2517_v9, %v1109_v26 }
 0x296   : > { %1856 = vmatmul.mubr.f32.gmra.mxu1 %v1120_v59 }
 0x297   : > { %v1994_v8 = vpop.eup %1993  ;;  %1858 = vmatprep.mubr.f32.mxu1 %v1121_v19 }
 0x298   : > { %v1094_v24 = vmul.f32 %v1994_v8, %v1070_v25 }
 0x29a   : > { %v1108_v30 = vmul.f32 %v2512_v61, %v1094_v24 }
 0x29b   : > { %v1996_v31 = vpop.eup %1995 }
 0x29c   : > { %v1122_v20 = vadd.f32 %v2517_v9, %v1108_v30  ;;  %v1096_v58 = vmul.f32 %v1996_v31, %v1072_v29 }
 0x29e   : > { %1859 = vmatmul.mubr.f32.gmra.mxu1 %v1122_v20  ;;  %v1110_v34 = vmul.f32 %v2512_v61, %v1096_v58 }
 0x29f   : > { %1861 = vmatprep.mubr.f32.mxu1 %v1123_v32  ;;  %v2581_v32 = vsub.s32 0, %v2559_v53 }
 0x2a0   : > { %v1124_v27 = vadd.f32 %v2517_v9, %v1110_v34  ;;  %v2584_v34 = vsub.s32 1, %v2559_v53 }
 0x2a2   : > { %1862 = vmatmul.mubr.f32.gmra.mxu1 %v1124_v27  ;;  %v2587_v27 = vsub.s32 2, %v2559_v53 }
 0x34e   : > { %v1854_v22 = vpop.f32.mrf.mxu1 }
 0x34f   : > { %v1241_v35 = vsel %vm1233_vm0, %v1854_v22, 0.0  ;;  %vm1679_vm0 = vcmask 7168  }
 0x350   : > { %v1191_v36 = vpop.f32.mrf.mxu1  ;;  %v1252_v15 = vsel %vm1248_vm1, %v1241_v35, 0.0 }
 0x351   : > { %v1240_v16 = vsel %vm1232_vm2, %v1191_v36, 0.0  ;;  %1253 = vadd.xlane.f32.xlu1 %v1252_v15  ;;  %v2596_v15 = vsub.s32 4, %v2559_v53 }
 0x352   : > { %v1249_v37 = vsel %vm1248_vm1, %v1240_v16, 0.0 }
 0x353   : > { %1250 = vadd.xlane.f32.xlu0 %v1249_v37 }
 0x356   : > { %v1857_v61 = vpop.f32.mrf.mxu1 }
 0x357   : > { %v1243_v9 = vsel %vm1235_vm3, %v1857_v61, 0.0 }
 0x358   : > { %v1201_v38 = vpop.f32.mrf.mxu1  ;;  %v1258_v40 = vsel %vm1248_vm1, %v1243_v9, 0.0 }
 0x359   : > { %v1242_v42 = vsel %vm1234_vm4, %v1201_v38, 0.0  ;;  %1259 = vadd.xlane.f32.xlu1 %v1258_v40 }
 0x35a   : > { %v1255_v43 = vsel %vm1248_vm1, %v1242_v42, 0.0  ;;  %v2600_v42 = vsub.s32 5, %v2559_v53 }
 0x35b   : > { %1256 = vadd.xlane.f32.xlu0 %v1255_v43 }
 0x35e   : > { %v1860_v41 = vpop.f32.mrf.mxu1 }
 0x35f   : > { %v1245_v21 = vsel %vm1237_vm5, %v1860_v41, 0.0 }
 0x360   : > { %v1211_v33 = vpop.f32.mrf.mxu1  ;;  %v1264_v3 = vsel %vm1248_vm1, %v1245_v21, 0.0 }
 0x361   : > { %v1244_v45 = vsel %vm1236_vm6, %v1211_v33, 0.0  ;;  %1265 = vadd.xlane.f32.xlu1 %v1264_v3  ;;  %v2604_v33 = vsub.s32 6, %v2559_v53 }
 0x362   : > { %v1863_v46 = vpop.f32.mrf.mxu1  ;;  %v1261_v23 = vsel %vm1248_vm1, %v1244_v45, 0.0 }
 0x363   : > { %v1247_v47 = vsel %vm1239_vm7, %v1863_v46, 0.0  ;;  %1262 = vadd.xlane.f32.xlu0 %v1261_v23  ;;  %v2608_v23 = vsub.s32 7, %v2559_v53 }
 0x364   : > { %v1221_v48 = vpop.f32.mrf.mxu1  ;;  %v1270_v39 = vsel %vm1248_vm1, %v1247_v47, 0.0 }
 0x365   : > { %v1246_v49 = vsel %vm1238_vm8, %v1221_v48, 0.0  ;;  %1271 = vadd.xlane.f32.xlu1 %v1270_v39 }
 0x366   : > { %v1267_v51 = vsel %vm1248_vm1, %v1246_v49, 0.0 }
 0x367   : > { %1268 = vadd.xlane.f32.xlu0 %v1267_v51 }
 0x3da   : > { %v1254_v44 = vpop.xlane.xlu1 %1253 }
 0x3db   : > { %v1275_v63 = vmul.f32 %v1273_v28, %v1254_v44 }
 0x3dc   : > { %v1251_v52 = vpop.xlane.xlu0 %1250 }
 0x3dd   : > { %v1274_v56 = vmul.f32 %v1273_v28, %v1251_v52  ;;  %v1297_v1 = vrot.slane %v1275_v63, %v2562_v50 }
 0x3df   : > { %v1293_v62 = vrot.slane %v1274_v56, %v2562_v50 }
 0x3e1   : > { %v1323_v5 = vsel %vm1322_vm9, %v1297_v1, %v1293_v62  ;;  %v1530_v1 = vld [vmem:[%s559_s14] sm:$0xff] }
 0x3e2   : > { %v1260_v0 = vpop.xlane.xlu1 %1259 }
 0x3e3   : > { %v1277_v4 = vmul.f32 %v1273_v28, %v1260_v0 }
 0x3e4   : > { %v1257_v57 = vpop.xlane.xlu0 %1256 }
 0x3e5   : > { %v1276_v60 = vmul.f32 %v1273_v28, %v1257_v57  ;;  %v1305_v14 = vrot.slane %v1277_v4, %v2562_v50 }
 0x3e7   : > { %v1301_v2 = vrot.slane %v1276_v60, %v2562_v50 }
 0x3e9   : > { %v1325_v11 = vsel %vm1324_vm10, %v1301_v2, %v1323_v5  ;;  %v1542_v5 = vrot.slane %v1530_v1, %v2584_v34 }
 0x3ea   : > { %v1266_v55 = vpop.xlane.xlu1 %1265  ;;  %v1327_v59 = vsel %vm1326_vm11, %v1305_v14, %v1325_v11  ;;  %v1556_v11 = vrot.slane %v1530_v1, %v2590_v12  ;;  %v1570_v14 = vrot.slane %v1530_v1, %v2600_v42 }
 0x3eb   : > { %v1279_v17 = vmul.f32 %v1273_v28, %v1266_v55  ;;  %v1535_v55 = vrot.slane %v1530_v1, %v2581_v32 }
 0x3ec   : > { %v1263_v54 = vpop.xlane.xlu0 %1262 }
 0x3ed   : > { %v1278_v13 = vmul.f32 %v1273_v28, %v1263_v54  ;;  %v1313_v24 = vrot.slane %v1279_v17, %v2562_v50  ;;  %v1549_v54 = vrot.slane %v1530_v1, %v2587_v27 }
 0x3ee   : > { %v1272_v18 = vpop.xlane.xlu1 %1271 }
 0x3ef   : > { %v1309_v6 = vrot.slane %v1278_v13, %v2562_v50  ;;  %v1281_v19 = vmul.f32 %v1273_v28, %v1272_v18  ;;  %v1584_v18 = vrot.slane %v1530_v1, %v2608_v23 }
 0x3f0   : > { %v1269_v7 = vpop.xlane.xlu0 %1268 }
 0x3f1   : > { %v1329_v25 = vsel %vm1328_vm12, %v1309_v6, %v1327_v59  ;;  %v1280_v8 = vmul.f32 %v1273_v28, %v1269_v7  ;;  %v1321_v29 = vrot.slane %v1281_v19, %v2562_v50 }
 0x3f2   : > { %v1331_v30 = vsel %vm1330_vm13, %v1313_v24, %v1329_v25 }
 0x3f3   : > { %v1317_v26 = vrot.slane %v1280_v8, %v2562_v50 }
 0x3f5   : > { %v1333_v31 = vsel %vm1332_vm14, %v1317_v26, %v1331_v30 }
 0x3f6   : > { %v1335_v20 = vsel %vm1334_vm15, %v1321_v29, %v1333_v31 }
 0x3f7   : > { %v1337_v58 = vsel %vm1248_vm1, %v1335_v20, -inf }
 0x3f8   : > { %1338 = vmax.xlane.f32.xlu0 %v1337_v58 }
 0x481   : > { %v1339_v10 = vpop.xlane.xlu0 %1338 }
 0x482   : > { %v1344_v22 = vrot.slane %v1339_v10, %v2581_v32  ;;  %v1348_v35 = vrot.slane %v1339_v10, %v2584_v34  ;;  %v1352_v36 = vrot.slane %v1339_v10, %v2587_v27  ;;  %v1356_v16 = vrot.slane %v1339_v10, %v2590_v12 }
 0x483   : > { %v1360_v43 = vrot.slane %v1339_v10, %v2596_v15  ;;  %v1364_v3 = vrot.slane %v1339_v10, %v2600_v42  ;;  %v1368_v47 = vrot.slane %v1339_v10, %v2604_v33  ;;  %v1372_v49 = vrot.slane %v1339_v10, %v2608_v23 }
 0x484   : > { %v1381_v37 = vsub.f32 %v1274_v56, %v1344_v22  ;;  %v1382_v61 = vsub.f32 %v1275_v63, %v1348_v35  ;;  %v1383_v9 = vsub.f32 %v1276_v60, %v1352_v36  ;;  %v1384_v41 = vsub.f32 %v1277_v4, %v1356_v16 }
 0x485   : > { %v1385_v45 = vsub.f32 %v1278_v13, %v1360_v43  ;;  %v1386_v48 = vsub.f32 %v1279_v17, %v1364_v3  ;;  %v1387_v51 = vsub.f32 %v1280_v8, %v1368_v47  ;;  %v1388_v53 = vsub.f32 %v1281_v19, %v1372_v49 }
 0x486   : > { %v1389_v38 = vmul.f32 1.442695, %v1381_v37  ;;  %v1391_v40 = vmul.f32 1.442695, %v1382_v61  ;;  %v1393_v21 = vmul.f32 1.442695, %v1383_v9  ;;  %v1563_v13 = vrot.slane %v1530_v1, %v2596_v15 }
 0x487   : > { %v1395_v46 = vmul.f32 1.442695, %v1384_v41  ;;  %v1397_v39 = vmul.f32 1.442695, %v1385_v45  ;;  %v1399_v52 = vmul.f32 1.442695, %v1386_v48  ;;  %v1577_v17 = vrot.slane %v1530_v1, %v2604_v33 }
 0x488   : > { %1997 = vpow2.f32 %v1389_v38  ;;  %v1401_v56 = vmul.f32 1.442695, %v1387_v51  ;;  %v1403_v60 = vmul.f32 1.442695, %v1388_v53 }
 0x489   : > { %1999 = vpow2.f32 %v1391_v40 }
 0x48a   : > { %2001 = vpow2.f32 %v1393_v21 }
 0x48b   : > { %2003 = vpow2.f32 %v1395_v46 }
 0x48c   : > { %2005 = vpow2.f32 %v1397_v39 }
 0x48d   : > { %2007 = vpow2.f32 %v1399_v52 }
 0x48e   : > { %2009 = vpow2.f32 %v1401_v56 }
 0x48f   : > { %2011 = vpow2.f32 %v1403_v60 }
 0x495   : > { %v2612_v44 = vpop.eup %1997 }
 0x496   : > { %v2614_v28 = vpop.eup %1999  ;;  %1414 = vperm.xlu1 %1935, %v2612_v44  }
 0x497   : > { %1417 = vperm.xlu0 %1936, %v2614_v28   ;;  %v2618_v57 = vpop.eup %2001 }
 0x498   : > { %v2621_v63 = vpop.eup %2003 }
 0x499   : > { %v2624_v0 = vpop.eup %2005 }
 0x49a   : > { %1420 = vperm.xlu1 %1935, %v2618_v57   ;;  %v2627_v62 = vpop.eup %2007 }
 0x49b   : > { %v2636_v2 = vpop.eup %2009  ;;  %1537 = vbcast.lane.b32.xlu0 %v1535_v55, 256 }
 0x49c   : > { %v2639_v4 = vpop.eup %2011 }
 0x49e   : > { %1423 = vperm.xlu1 %1935, %v2621_v63  }
 0x49f   : > { %1544 = vbcast.lane.b32.xlu0 %v1542_v5, 256 }
 0x4a2   : > { %1426 = vperm.xlu1 %1935, %v2624_v0  }
 0x4a3   : > { %1551 = vbcast.lane.b32.xlu0 %v1549_v54, 256 }
 0x4a6   : > { %1429 = vperm.xlu1 %1935, %v2627_v62  }
 0x4a7   : > { %1558 = vbcast.lane.b32.xlu0 %v1556_v11, 256 }
 0x4aa   : > { %1432 = vperm.xlu1 %1935, %v2636_v2  }
 0x4ab   : > { %1565 = vbcast.lane.b32.xlu0 %v1563_v13, 256 }
 0x4ae   : > { %1435 = vperm.xlu1 %1935, %v2639_v4  }
 0x4af   : > { %1572 = vbcast.lane.b32.xlu0 %v1570_v14, 256 }
 0x4b3   : > { %1579 = vbcast.lane.b32.xlu0 %v1577_v17, 256 }
 0x4b7   : > { %1586 = vbcast.lane.b32.xlu0 %v1584_v18, 256 }
 0x511   : > { %v1415_v6 = vpop.permute.xlu1 %1414 }
 0x512   : > { %v1418_v25 = vpop.permute.xlu0 %1417  ;;  %v1440_v26 = vrot.slane %v1415_v6, %v2562_v50 }
 0x513   : > { %v1444_v24 = vrot.slane %v1418_v25, %v2562_v50 }
 0x515   : > { %v1421_v59 = vpop.permute.xlu1 %1420  ;;  %v1469_v58 = vsel %vm1322_vm9, %v1444_v24, %v1440_v26 }
 0x516   : > { %v1448_v29 = vrot.slane %v1421_v59, %v2562_v50  ;;  %v1538_v41 = vpop.permute.xlu0 %1537 }
 0x518   : > { %v1470_v22 = vsel %vm1324_vm10, %v1448_v29, %v1469_v58 }
 0x519   : > { %v1424_v19 = vpop.permute.xlu1 %1423 }
 0x51a   : > { %v1452_v30 = vrot.slane %v1424_v19, %v2562_v50  ;;  %v1545_v21 = vpop.permute.xlu0 %1544 }
 0x51c   : > { %v1471_v36 = vsel %vm1326_vm11, %v1452_v30, %v1470_v22 }
 0x51d   : > { %v1427_v7 = vpop.permute.xlu1 %1426 }
 0x51e   : > { %v1456_v31 = vrot.slane %v1427_v7, %v2562_v50  ;;  %v1552_v3 = vpop.permute.xlu0 %1551 }
 0x520   : > { %v1472_v16 = vsel %vm1328_vm12, %v1456_v31, %v1471_v36 }
 0x521   : > { %v1430_v8 = vpop.permute.xlu1 %1429 }
 0x522   : > { %v1460_v10 = vrot.slane %v1430_v8, %v2562_v50  ;;  %v1559_v46 = vpop.permute.xlu0 %1558 }
 0x524   : > { %v1473_v61 = vsel %vm1330_vm13, %v1460_v10, %v1472_v16 }
 0x525   : > { %v1433_v20 = vpop.permute.xlu1 %1432 }
 0x526   : > { %v1464_v35 = vrot.slane %v1433_v20, %v2562_v50  ;;  %v1566_v47 = vpop.permute.xlu0 %1565 }
 0x528   : > { %v1474_v38 = vsel %vm1332_vm14, %v1464_v35, %v1473_v61 }
 0x529   : > { %v1436_v37 = vpop.permute.xlu1 %1435 }
 0x52a   : > { %v1468_v9 = vrot.slane %v1436_v37, %v2562_v50  ;;  %v1573_v48 = vpop.permute.xlu0 %1572 }
 0x52c   : > { %v1475_v40 = vsel %vm1334_vm15, %v1468_v9, %v1474_v38 }
 0x52d   : > { %v1477_v43 = vsel %vm1248_vm1, %v1475_v40, 0.0 }
 0x52e   : > { %1478 = vadd.xlane.f32.xlu1 %v1477_v43  ;;  %v1580_v55 = vpop.permute.xlu0 %1579 }
 0x5b7   : > { %v1479_v45 = vpop.xlane.xlu1 %1478 }
 0x5b8   : > { %2013 = vrcp.f32 %v1479_v45 }
 0x5c5   : > { %v2014_v39 = vpop.eup %2013 }
 0x5c6   : > { %v1505_v49 = vrot.slane %v2014_v39, %v2600_v42  ;;  %v1489_v51 = vrot.slane %v2014_v39, %v2584_v34  ;;  %v1485_v52 = vrot.slane %v2014_v39, %v2581_v32  ;;  %v1493_v53 = vrot.slane %v2014_v39, %v2587_v27 }
 0x5c7   : > { %v1497_v1 = vrot.slane %v2014_v39, %v2590_v12  ;;  %v1513_v5 = vrot.slane %v2014_v39, %v2608_v23  ;;  %v1501_v32 = vrot.slane %v2014_v39, %v2596_v15  ;;  %v1587_v12 = vpop.permute.xlu0 %1586  ;;  %v1509_v14 = vrot.slane %v2014_v39, %v2604_v33 }
 0x5c8   : > { %v1523_v56 = vmul.f32 %v2614_v28, %v1489_v51  ;;  %v1522_v60 = vmul.f32 %v2612_v44, %v1485_v52  ;;  %v1527_v54 = vmul.f32 %v2627_v62, %v1505_v49  ;;  %v1524_v42 = vmul.f32 %v2618_v57, %v1493_v53 }
 0x5c9   : > { %v1525_v34 = vmul.f32 %v2621_v63, %v1497_v1  ;;  %v1529_v44 = vmul.f32 %v2639_v4, %v1513_v5  ;;  %v1526_v62 = vmul.f32 %v2624_v0, %v1501_v32  ;;  %v1528_v15 = vmul.f32 %v2636_v2, %v1509_v14 }
 0x5ca   : > { %v1597_v11 = vmul.f32 %v1545_v21, %v1523_v56  ;;  %v1596_v13 = vmul.f32 %v1538_v41, %v1522_v60  ;;  %v1601_v27 = vmul.f32 %v1573_v48, %v1527_v54  ;;  %v1598_v28 = vmul.f32 %v1552_v3, %v1524_v42 }
 0x5cb   : > { %v1599_v23 = vmul.f32 %v1559_v46, %v1525_v34  ;;  %v1603_v17 = vmul.f32 %v1587_v12, %v1529_v44  ;;  %v1600_v57 = vmul.f32 %v1566_v47, %v1526_v62  ;;  %v1602_v63 = vmul.f32 %v1580_v55, %v1528_v15 }
 0x5cc   : > { %1616 = vperm.xlu0 %1936, %v1597_v11   ;;  %1613 = vperm.xlu1 %1935, %v1596_v13  }
 0x5d0   : > { %1619 = vperm.xlu0 %1936, %v1598_v28   ;;  %1628 = vperm.xlu1 %1935, %v1601_v27  }
 0x5d4   : > { %1622 = vperm.xlu0 %1936, %v1599_v23   ;;  %1634 = vperm.xlu1 %1935, %v1603_v17  }
 0x5d8   : > { %1625 = vperm.xlu0 %1936, %v1600_v57  }
 0x5dc   : > { %1631 = vperm.xlu0 %1936, %v1602_v63  }
 0x647   : > { %v1617_v18 = vpop.permute.xlu0 %1616  ;;  %v1614_v4 = vpop.permute.xlu1 %1613 }
 0x648   : > { %v1643_v59 = vrot.slane %v1617_v18, %v2562_v50  ;;  %v1639_v19 = vrot.slane %v1614_v4, %v2562_v50 }
 0x64a   : > { %v1668_v8 = vsel %vm1322_vm9, %v1643_v59, %v1639_v19 }
 0x64b   : > { %v1620_v6 = vpop.permute.xlu0 %1619  ;;  %v1629_v33 = vpop.permute.xlu1 %1628 }
 0x64c   : > { %v1647_v0 = vrot.slane %v1620_v6, %v2562_v50  ;;  %v1659_v20 = vrot.slane %v1629_v33, %v2562_v50 }
 0x64e   : > { %v1669_v24 = vsel %vm1324_vm10, %v1647_v0, %v1668_v8 }
 0x64f   : > { %v1623_v7 = vpop.permute.xlu0 %1622  ;;  %v1635_v30 = vpop.permute.xlu1 %1634 }
 0x650   : > { %v1651_v25 = vrot.slane %v1623_v7, %v2562_v50  ;;  %v1667_v22 = vrot.slane %v1635_v30, %v2562_v50 }
 0x652   : > { %v1670_v29 = vsel %vm1326_vm11, %v1651_v25, %v1669_v24 }
 0x653   : > { %v1626_v2 = vpop.permute.xlu0 %1625 }
 0x654   : > { %v1655_v26 = vrot.slane %v1626_v2, %v2562_v50 }
 0x656   : > { %v1671_v31 = vsel %vm1328_vm12, %v1655_v26, %v1670_v29 }
 0x657   : > { %v1632_v58 = vpop.permute.xlu0 %1631  ;;  %v1672_v35 = vsel %vm1330_vm13, %v1659_v20, %v1671_v31 }
 0x658   : > { %v1663_v10 = vrot.slane %v1632_v58, %v2562_v50 }
 0x65a   : > { %v1673_v36 = vsel %vm1332_vm14, %v1663_v10, %v1672_v35 }
 0x65b   : > { %v1674_v16 = vsel %vm1334_vm15, %v1667_v22, %v1673_v36 }
 0x65c   : > { %v1676_v37 = vsel %vm1248_vm1, %v1674_v16, 0.0 }
 0x65d   : > { %1677 = vadd.xlane.f32.xlu0 %v1676_v37 }
 0x6e6   : > { %v1678_v61 = vpop.xlane.xlu0 %1677 }
 0x6e7   : > { %1680 = vst.msk [vmem:[%s563_s27] sm:$0xff] %vm1679_vm0, %v1678_v61 }
 0x6e8 PF: > { %s2756_s23 = sld [smem:[#allocation9_spill]]  ;;  %s2757_s20 = smov %s2099_s21 }
 0x6e9   : > { %s2758_s21 = smov %s2103_s22  ;;  %s2759_s22 = smov %s2260_s17 }
 0x6ee   : > { %p27_p0 = scmp.ge.s32.totalorder %s2756_s23, 4  }
 0x6f0   :  { %29 = sbr.rel (!%p27_p0) target bundleno = 11 (0xb), region = 130 }
 0x6f5   :  { %1700 = vsyncpa [#allocation4], 1 }
 0x6f6   :  { %1702 = vsyncpa [#allocation4 + $0x1], 1 }
 0x6f7   :  { %1703 = vsyncpa [#allocation6], 1 }

</bundles_post_ra>
